<compile_context>
chip_gen: v7x
topology: tpu7x:2x2x1
jax: 0.10.0
libtpu: 0.0.40
codegen_flags: <defaults>
</compile_context>

<pallas_src>
import numpy as np
import jax
import jax.numpy as jnp
from jax.experimental import pallas as pl
from jax.experimental.pallas import tpu as pltpu

# ----------------------------- small synthetic config -----------------------------
IMAGE_SIZE = 32
PATCH_SIZE = 8
CHANNELS = 3
HIDDEN = 32
HEADS = 4
HEAD_DIM = HIDDEN // HEADS
INTERMEDIATE = 64
NUM_LAYERS = 2
SELECT_LAYER = -2          # args.mm_vision_select_layer
NUM_COUNT = 8              # reference hard-codes 256; scaled down to fit 16 patches
BATCH = 2
EPS = 1e-5

NUM_PATCHES = (IMAGE_SIZE // PATCH_SIZE) ** 2   # 16
SEQ = NUM_PATCHES + 1                            # 17 (CLS + patches)
CPP = CHANNELS * PATCH_SIZE * PATCH_SIZE         # 192 (patchified pixel dim)

HP = 128                                         # hidden dim padded to one full lane
IP = 128                                         # intermediate dim padded to 128


# ============================== in-kernel helpers ==================================
def _masked_layernorm(x, g, b, mask):
    """LayerNorm over the real HIDDEN features of a lane-padded [S, HP] tile.

    Padded columns of `x` are guaranteed to be exactly zero, so sum(x) == sum over
    real columns; the variance uses a column mask so padding never contributes.
    Matches nn.LayerNorm(eps=1e-5) on the real columns; padded outputs stay zero
    because gamma/beta are zero-padded.
    """
    mean = jnp.sum(x, axis=-1, keepdims=True) * (1.0 / HIDDEN)
    diff = x - mean
    dm = diff * mask
    var = jnp.sum(dm * dm, axis=-1, keepdims=True) * (1.0 / HIDDEN)
    return diff * jax.lax.rsqrt(var + EPS) * g + b


def _feature_mask():
    col = jax.lax.broadcasted_iota(jnp.int32, (1, HP), 1)
    return (col < HIDDEN).astype(jnp.float32)


# ================================ Pallas kernels ===================================
def _embed_kernel(x_ref, w_ref, base_ref, g_ref, b_ref, o_ref):
    """Patch-embed matmul + (CLS/pos) add + CLIP pre_layrnorm, for one batch element.

    x_ref:   [SEQ, CPP]  (row 0 is zeros -> CLS slot; rows 1.. are patch pixels)
    w_ref:   [CPP, HP]   bf16, zero-padded beyond HIDDEN output cols
    base_ref:[SEQ, HP]   f32, pos embedding (+ class embedding folded into row 0)
    """
    x = x_ref[...].astype(jnp.bfloat16)
    h0 = jnp.dot(x, w_ref[...], preferred_element_type=jnp.float32) + base_ref[...]
    o_ref[...] = _masked_layernorm(h0, g_ref[...], b_ref[...], _feature_mask())


def _make_layer_kernel(emit_attn):
    """One fused CLIP encoder layer for one batch element (everything in VMEM)."""

    def kernel(h_ref, ln1g_ref, ln1b_ref, qkvw_ref, qkvb_ref, ow_ref, ob_ref,
               ln2g_ref, ln2b_ref, f1w_ref, f1b_ref, f2w_ref, f2b_ref, *outs):
        out_ref = outs[0]
        mask = _feature_mask()

        h = h_ref[...]                                              # [SEQ, HP] f32

        # --- self attention block ---
        hn = _masked_layernorm(h, ln1g_ref[...], ln1b_ref[...], mask)
        # fused Q/K/V projection (q weights/bias pre-scaled by head_dim**-0.5)
        qkv = jnp.dot(hn.astype(jnp.bfloat16), qkvw_ref[...],
                      preferred_element_type=jnp.float32) + qkvb_ref[...]  # [SEQ, 3*HP]

        ow = ow_ref[...]                                            # [HIDDEN, HP] bf16
        acc = jnp.zeros((SEQ, HP), jnp.float32)
        cls_rows = []
        for hd in range(HEADS):
            q_h = qkv[:, hd * HEAD_DIM:(hd + 1) * HEAD_DIM]                 # [SEQ, d]
            k_h = qkv[:, HP + hd * HEAD_DIM:HP + (hd + 1) * HEAD_DIM]       # [SEQ, d]
            v_h = qkv[:, 2 * HP + hd * HEAD_DIM:2 * HP + (hd + 1) * HEAD_DIM]
            # scores = q @ k^T (f32 so the attention weights used by feature_select
            # stay accurate); softmax in f32 with EUP reciprocal.
            s = jax.lax.dot_general(q_h, k_h, (((1,), (1,)), ((), ())),
                                    preferred_element_type=jnp.float32)     # [SEQ, SEQ]
            m = jnp.max(s, axis=-1, keepdims=True)
            e = jnp.exp(s - m)
            p = e * pl.reciprocal(jnp.sum(e, axis=-1, keepdims=True), approx=True)
            ctx = jnp.dot(p.astype(jnp.bfloat16), v_h.astype(jnp.bfloat16),
                          preferred_element_type=jnp.float32)               # [SEQ, d]
            # fold the per-head out-projection slice in here (avoids a lane concat)
            acc = acc + jnp.dot(ctx.astype(jnp.bfloat16),
                                ow[hd * HEAD_DIM:(hd + 1) * HEAD_DIM, :],
                                preferred_element_type=jnp.float32)         # [SEQ, HP]
            if emit_attn:
                cls_rows.append(p[0:1, :])                                  # CLS query row

        h_attn = h + acc + ob_ref[...]                              # residual add (fused)

        # --- MLP block ---
        hn2 = _masked_layernorm(h_attn, ln2g_ref[...], ln2b_ref[...], mask)
        f = jnp.dot(hn2.astype(jnp.bfloat16), f1w_ref[...],
                    preferred_element_type=jnp.float32) + f1b_ref[...]      # [SEQ, IP]
        f = f * jax.nn.sigmoid(1.702 * f)                           # quickGELU (f32 VPU/EUP)
        mlp = jnp.dot(f.astype(jnp.bfloat16), f2w_ref[...],
                      preferred_element_type=jnp.float32) + f2b_ref[...]    # [SEQ, HP]

        out_ref[...] = h_attn + mlp                                 # residual add (fused)

        if emit_attn:
            outs[1][...] = jnp.concatenate(cls_rows, axis=0)        # [HEADS, SEQ]

    return kernel


# =============================== pallas_call wrappers ==============================
_PARALLEL_B = pltpu.CompilerParams(dimension_semantics=("parallel",))


def embed(x_tok, prep):
    B = x_tok.shape[0]
    return pl.pallas_call(
        _embed_kernel,
        out_shape=jax.ShapeDtypeStruct((B, SEQ, HP), jnp.float32),
        grid=(B,),
        in_specs=[
            pl.BlockSpec((None, SEQ, CPP), lambda b: (b, 0, 0)),
            pl.BlockSpec((CPP, HP), lambda b: (0, 0)),
            pl.BlockSpec((SEQ, HP), lambda b: (0, 0)),
            pl.BlockSpec((1, HP), lambda b: (0, 0)),
            pl.BlockSpec((1, HP), lambda b: (0, 0)),
        ],
        out_specs=pl.BlockSpec((None, SEQ, HP), lambda b: (b, 0, 0)),
        compiler_params=_PARALLEL_B,
    )(x_tok, prep["patch_w"], prep["base"], prep["pre_g"], prep["pre_b"])


def encoder_layer(h, lp, emit_attn):
    B = h.shape[0]
    w_specs = [
        pl.BlockSpec((1, HP), lambda b: (0, 0)),        # ln1_g
        pl.BlockSpec((1, HP), lambda b: (0, 0)),        # ln1_b
        pl.BlockSpec((HP, 3 * HP), lambda b: (0, 0)),   # qkv_w (fused, pre-scaled q)
        pl.BlockSpec((1, 3 * HP), lambda b: (0, 0)),    # qkv_b
        pl.BlockSpec((HIDDEN, HP), lambda b: (0, 0)),   # o_w
        pl.BlockSpec((1, HP), lambda b: (0, 0)),        # o_b
        pl.BlockSpec((1, HP), lambda b: (0, 0)),        # ln2_g
        pl.BlockSpec((1, HP), lambda b: (0, 0)),        # ln2_b
        pl.BlockSpec((HP, IP), lambda b: (0, 0)),       # fc1_w
        pl.BlockSpec((1, IP), lambda b: (0, 0)),        # fc1_b
        pl.BlockSpec((IP, HP), lambda b: (0, 0)),       # fc2_w
        pl.BlockSpec((1, HP), lambda b: (0, 0)),        # fc2_b
    ]
    in_specs = [pl.BlockSpec((None, SEQ, HP), lambda b: (b, 0, 0))] + w_specs
    if emit_attn:
        out_shape = (jax.ShapeDtypeStruct((B, SEQ, HP), jnp.float32),
                     jax.ShapeDtypeStruct((B, HEADS, SEQ), jnp.float32))
        out_specs = (pl.BlockSpec((None, SEQ, HP), lambda b: (b, 0, 0)),
                     pl.BlockSpec((None, HEADS, SEQ), lambda b: (b, 0, 0)))
    else:
        out_shape = jax.ShapeDtypeStruct((B, SEQ, HP), jnp.float32)
        out_specs = pl.BlockSpec((None, SEQ, HP), lambda b: (b, 0, 0))

    return pl.pallas_call(
        _make_layer_kernel(emit_attn),
        out_shape=out_shape,
        grid=(B,),
        in_specs=in_specs,
        out_specs=out_specs,
        compiler_params=_PARALLEL_B,
    )(h, lp["ln1_g"], lp["ln1_b"], lp["qkv_w"], lp["qkv_b"], lp["o_w"], lp["o_b"],
      lp["ln2_g"], lp["ln2_b"], lp["fc1_w"], lp["fc1_b"], lp["fc2_w"], lp["fc2_b"])


# ============================ parameter initialization =============================
def init_params(key):
    def normal(k, shape, scale=0.02):
        return scale * jax.random.normal(k, shape, dtype=jnp.float32)

    keys = iter(jax.random.split(key, 8 + NUM_LAYERS * 16))
    params = {
        # conv weight (hidden, C, p, p) flattened to matmul form (C*p*p, hidden); no bias
        "patch_embed_w": normal(next(keys), (CPP, HIDDEN)),
        "class_embedding": normal(next(keys), (HIDDEN,)),
        "pos_embedding": normal(next(keys), (SEQ, HIDDEN)),
        "pre_ln_g": jnp.ones((HIDDEN,), jnp.float32),
        "pre_ln_b": jnp.zeros((HIDDEN,), jnp.float32),
        "layers": [],
    }
    for _ in range(NUM_LAYERS):
        layer = {
            "ln1_g": jnp.ones((HIDDEN,), jnp.float32),
            "ln1_b": jnp.zeros((HIDDEN,), jnp.float32),
            "q_w": normal(next(keys), (HIDDEN, HIDDEN)),
            "q_b": normal(next(keys), (HIDDEN,)),
            "k_w": normal(next(keys), (HIDDEN, HIDDEN)),
            "k_b": normal(next(keys), (HIDDEN,)),
            "v_w": normal(next(keys), (HIDDEN, HIDDEN)),
            "v_b": normal(next(keys), (HIDDEN,)),
            "o_w": normal(next(keys), (HIDDEN, HIDDEN)),
            "o_b": normal(next(keys), (HIDDEN,)),
            "ln2_g": jnp.ones((HIDDEN,), jnp.float32),
            "ln2_b": jnp.zeros((HIDDEN,), jnp.float32),
            "fc1_w": normal(next(keys), (HIDDEN, INTERMEDIATE)),
            "fc1_b": normal(next(keys), (INTERMEDIATE,)),
            "fc2_w": normal(next(keys), (INTERMEDIATE, HIDDEN)),
            "fc2_b": normal(next(keys), (HIDDEN,)),
        }
        params["layers"].append(layer)
    return params


def prepare_params(params):
    """Pad params to the lane-dense (128-wide) layout, fuse QKV, fold in the q scale,
    and cast matmul weights to bf16 (biases / LN params / embeddings stay f32)."""
    scale = HEAD_DIM ** -0.5

    def pad2(w, rows, cols):
        out = jnp.zeros((rows, cols), jnp.float32)
        return out.at[: w.shape[0], : w.shape[1]].set(w)

    prep = {
        "patch_w": pad2(params["patch_embed_w"], CPP, HP).astype(jnp.bfloat16),
        "pre_g": pad2(params["pre_ln_g"].reshape(1, HIDDEN), 1, HP),
        "pre_b": pad2(params["pre_ln_b"].reshape(1, HIDDEN), 1, HP),
    }
    base = pad2(params["pos_embedding"], SEQ, HP)
    base = base.at[0, :HIDDEN].add(params["class_embedding"])
    prep["base"] = base

    layers = []
    for lp in params["layers"]:
        qkv_w = jnp.zeros((HP, 3 * HP), jnp.float32)
        qkv_w = qkv_w.at[:HIDDEN, 0:HIDDEN].set(lp["q_w"] * scale)
        qkv_w = qkv_w.at[:HIDDEN, HP:HP + HIDDEN].set(lp["k_w"])
        qkv_w = qkv_w.at[:HIDDEN, 2 * HP:2 * HP + HIDDEN].set(lp["v_w"])
        qkv_b = jnp.zeros((1, 3 * HP), jnp.float32)
        qkv_b = qkv_b.at[0, 0:HIDDEN].set(lp["q_b"] * scale)
        qkv_b = qkv_b.at[0, HP:HP + HIDDEN].set(lp["k_b"])
        qkv_b = qkv_b.at[0, 2 * HP:2 * HP + HIDDEN].set(lp["v_b"])
        layers.append({
            "ln1_g": pad2(lp["ln1_g"].reshape(1, HIDDEN), 1, HP),
            "ln1_b": pad2(lp["ln1_b"].reshape(1, HIDDEN), 1, HP),
            "qkv_w": qkv_w.astype(jnp.bfloat16),
            "qkv_b": qkv_b,
            "o_w": pad2(lp["o_w"], HIDDEN, HP).astype(jnp.bfloat16),
            "o_b": pad2(lp["o_b"].reshape(1, HIDDEN), 1, HP),
            "ln2_g": pad2(lp["ln2_g"].reshape(1, HIDDEN), 1, HP),
            "ln2_b": pad2(lp["ln2_b"].reshape(1, HIDDEN), 1, HP),
            "fc1_w": pad2(lp["fc1_w"], HP, IP).astype(jnp.bfloat16),
            "fc1_b": pad2(lp["fc1_b"].reshape(1, INTERMEDIATE), 1, IP),
            "fc2_w": pad2(lp["fc2_w"], IP, HP).astype(jnp.bfloat16),
            "fc2_b": pad2(lp["fc2_b"].reshape(1, HIDDEN), 1, HP),
        })
    prep["layers"] = layers
    return prep


# =============================== model forward pass ================================
def _patchify(images):
    """[B, C, H, W] -> [B, SEQ, C*p*p] with a zero row 0 (CLS slot)."""
    B = images.shape[0]
    gh = IMAGE_SIZE // PATCH_SIZE
    x = images.astype(jnp.float32).reshape(B, CHANNELS, gh, PATCH_SIZE, gh, PATCH_SIZE)
    x = x.transpose(0, 2, 4, 1, 3, 5).reshape(B, gh * gh, CPP)
    return jnp.concatenate([jnp.zeros((B, 1, CPP), jnp.float32), x], axis=1)


def vision_tower_forward(prep, images):
    """Runs the vision tower; returns only what CLIPVisionTower.forward consumes:
    hidden_states[SELECT_LAYER] (unpadded) and the CLS attention row of that layer."""
    x_tok = _patchify(images)
    h = embed(x_tok, prep)                         # [B, SEQ, HP]

    sel_idx = NUM_LAYERS + SELECT_LAYER            # layer whose output & attention are used
    sel_hidden = None
    sel_attn = None
    for li, lp in enumerate(prep["layers"]):
        if li == sel_idx:
            h, attn_cls = encoder_layer(h, lp, emit_attn=True)
            sel_hidden, sel_attn = h, attn_cls
        else:
            h = encoder_layer(h, lp, emit_attn=False)
    return sel_hidden[:, :, :HIDDEN], sel_attn     # [B, SEQ, HIDDEN], [B, HEADS, SEQ]


_tower_forward_jit = jax.jit(vision_tower_forward)


# ============================ feature_select (host side) ===========================
# TODO(synk): argsort + python-set-union token selection is data-dependent control
#             flow with no clean Pallas equivalent; it runs host-side in numpy,
#             mirroring the PyTorch reference line-by-line (only the CLS attention
#             row is needed, so that is all we ship off-device).
def feature_select(image_features_np, attn_cls_np, num_count=NUM_COUNT):
    per_head_num = int(num_count / attn_cls_np.shape[1])
    selected_query = None
    for ind in range(attn_cls_np.shape[0]):
        max_indices = []
        for ind_y in range(attn_cls_np.shape[1]):
            tmp_attn = attn_cls_np[ind, ind_y, 1:]
            tmp_ind_sorted = (np.argsort(tmp_attn) + 1).tolist()
            tmp_res = set(max_indices + tmp_ind_sorted[-per_head_num:] + [0])
            count = 1
            while len(tmp_res) < ind_y * per_head_num + per_head_num + 1:
                tmp_res = set(max_indices + tmp_ind_sorted[-per_head_num - count:] + [0])
                count += 1
            max_indices = sorted(list(tmp_res))
        sel = image_features_np[ind, max_indices, :][None, ...]
        selected_query = sel if selected_query is None else np.concatenate(
            [selected_query, sel], axis=0
        )
    return image_features_np, selected_query


def clip_vision_tower_forward(prep, images):
    """Equivalent of CLIPVisionTower.forward for a batched tensor input."""
    sel_hidden, sel_attn = _tower_forward_jit(prep, images)
    image_features, selected_query = feature_select(np.asarray(sel_hidden),
                                                    np.asarray(sel_attn))
    image_features = jnp.asarray(image_features).astype(images.dtype)
    selected_query = jnp.asarray(selected_query).astype(images.dtype)
    return image_features, selected_query


# ====================================== main =======================================
if __name__ == "__main__":
    key = jax.random.PRNGKey(0)
    pkey, xkey = jax.random.split(key)
    params = init_params(pkey)
    prep = prepare_params(params)
    images = jax.random.normal(xkey, (BATCH, CHANNELS, IMAGE_SIZE, IMAGE_SIZE),
                               dtype=jnp.float32)

    image_features, selected_query = clip_vision_tower_forward(prep, images)
    jax.block_until_ready(image_features)
    jax.block_until_ready(selected_query)

    # sanity checks on shapes implied by the reference semantics
    assert image_features.shape == (BATCH, SEQ, HIDDEN)
    assert selected_query.shape == (BATCH, NUM_COUNT + 1, HIDDEN)
    assert bool(jnp.all(jnp.isfinite(image_features)))
    assert bool(jnp.all(jnp.isfinite(selected_query)))

    print("KERNEL_OK")
</pallas_src>

<mosaic_0001>
module attributes {stable_mosaic.version = 11 : i64} {
  func.func @kernel(%arg0: i32, %arg1: memref<1x17x128xf32, #tpu.memory_space<vmem>>, %arg2: memref<1x128xf32, #tpu.memory_space<vmem>>, %arg3: memref<1x128xf32, #tpu.memory_space<vmem>>, %arg4: memref<128x384xbf16, #tpu.memory_space<vmem>>, %arg5: memref<1x384xf32, #tpu.memory_space<vmem>>, %arg6: memref<32x128xbf16, #tpu.memory_space<vmem>>, %arg7: memref<1x128xf32, #tpu.memory_space<vmem>>, %arg8: memref<1x128xf32, #tpu.memory_space<vmem>>, %arg9: memref<1x128xf32, #tpu.memory_space<vmem>>, %arg10: memref<128x128xbf16, #tpu.memory_space<vmem>>, %arg11: memref<1x128xf32, #tpu.memory_space<vmem>>, %arg12: memref<128x128xbf16, #tpu.memory_space<vmem>>, %arg13: memref<1x128xf32, #tpu.memory_space<vmem>>, %arg14: memref<1x17x128xf32, #tpu.memory_space<vmem>>, %arg15: memref<1x4x17xf32, #tpu.memory_space<vmem>>) attributes {dimension_semantics = [#tpu.dimension_semantics<parallel>], iteration_bounds = array<i64: 2>, scalar_prefetch = 0 : i64, scratch_operands = 0 : i64, tpu.core_type = #tpu.core_type<tc>, window_params = [{transform_indices = @transform_0, window_bounds = array<i64: 1, 17, 128>}, {pipeline_mode = #tpu.pipeline_mode<synchronous>, transform_indices = @transform_1, window_bounds = array<i64: 1, 128>}, {pipeline_mode = #tpu.pipeline_mode<synchronous>, transform_indices = @transform_2, window_bounds = array<i64: 1, 128>}, {pipeline_mode = #tpu.pipeline_mode<synchronous>, transform_indices = @transform_3, window_bounds = array<i64: 128, 384>}, {pipeline_mode = #tpu.pipeline_mode<synchronous>, transform_indices = @transform_4, window_bounds = array<i64: 1, 384>}, {pipeline_mode = #tpu.pipeline_mode<synchronous>, transform_indices = @transform_5, window_bounds = array<i64: 32, 128>}, {pipeline_mode = #tpu.pipeline_mode<synchronous>, transform_indices = @transform_6, window_bounds = array<i64: 1, 128>}, {pipeline_mode = #tpu.pipeline_mode<synchronous>, transform_indices = @transform_7, window_bounds = array<i64: 1, 128>}, {pipeline_mode = #tpu.pipeline_mode<synchronous>, transform_indices = @transform_8, window_bounds = array<i64: 1, 128>}, {pipeline_mode = #tpu.pipeline_mode<synchronous>, transform_indices = @transform_9, window_bounds = array<i64: 128, 128>}, {pipeline_mode = #tpu.pipeline_mode<synchronous>, transform_indices = @transform_10, window_bounds = array<i64: 1, 128>}, {pipeline_mode = #tpu.pipeline_mode<synchronous>, transform_indices = @transform_11, window_bounds = array<i64: 128, 128>}, {pipeline_mode = #tpu.pipeline_mode<synchronous>, transform_indices = @transform_12, window_bounds = array<i64: 1, 128>}, {transform_indices = @transform_13, window_bounds = array<i64: 1, 17, 128>}, {transform_indices = @transform_14, window_bounds = array<i64: 1, 4, 17>}]} {
    %0 = tpu.iota {dimensions = array<i32: 1>} : vector<1x128xi32>
    %c32_i32 = arith.constant 32 : i32
    %1 = vector.broadcast %c32_i32 : i32 to vector<1x128xi32>
    %2 = arith.cmpi slt, %0, %1 : vector<1x128xi32>
    %3 = arith.extui %2 : vector<1x128xi1> to vector<1x128xi32>
    %4 = arith.sitofp %3 : vector<1x128xi32> to vector<1x128xf32>
    %c0 = arith.constant 0 : index
    %c0_0 = arith.constant 0 : index
    %c0_1 = arith.constant 0 : index
    %5 = vector.load %arg1[%c0, %c0_0, %c0_1] : memref<1x17x128xf32, #tpu.memory_space<vmem>>, vector<1x17x128xf32>
    %6 = vector.shape_cast %5 : vector<1x17x128xf32> to vector<17x128xf32>
    %c0_2 = arith.constant 0 : index
    %c0_3 = arith.constant 0 : index
    %7 = vector.load %arg2[%c0_2, %c0_3] : memref<1x128xf32, #tpu.memory_space<vmem>>, vector<1x128xf32>
    %c0_4 = arith.constant 0 : index
    %c0_5 = arith.constant 0 : index
    %8 = vector.load %arg3[%c0_4, %c0_5] : memref<1x128xf32, #tpu.memory_space<vmem>>, vector<1x128xf32>
    %cst = arith.constant dense<0.000000e+00> : vector<17xf32>
    %9 = vector.multi_reduction <add>, %6, %cst [1] : vector<17x128xf32> to vector<17xf32>
    %10 = vector.shape_cast %9 : vector<17xf32> to vector<17x1xf32>
    %cst_6 = arith.constant 3.125000e-02 : f32
    %11 = vector.broadcast %cst_6 : f32 to vector<17x1xf32>
    %12 = arith.mulf %10, %11 : vector<17x1xf32>
    %13 = vector.broadcast %12 : vector<17x1xf32> to vector<17x128xf32>
    %14 = arith.subf %6, %13 : vector<17x128xf32>
    %15 = vector.broadcast %4 : vector<1x128xf32> to vector<17x128xf32>
    %16 = arith.mulf %14, %15 : vector<17x128xf32>
    %17 = arith.mulf %16, %16 : vector<17x128xf32>
    %cst_7 = arith.constant dense<0.000000e+00> : vector<17xf32>
    %18 = vector.multi_reduction <add>, %17, %cst_7 [1] : vector<17x128xf32> to vector<17xf32>
    %19 = vector.shape_cast %18 : vector<17xf32> to vector<17x1xf32>
    %cst_8 = arith.constant 3.125000e-02 : f32
    %20 = vector.broadcast %cst_8 : f32 to vector<17x1xf32>
    %21 = arith.mulf %19, %20 : vector<17x1xf32>
    %cst_9 = arith.constant 9.99999974E-6 : f32
    %22 = vector.broadcast %cst_9 : f32 to vector<17x1xf32>
    %23 = arith.addf %21, %22 : vector<17x1xf32>
    %24 = math.rsqrt %23 : vector<17x1xf32>
    %25 = vector.broadcast %24 : vector<17x1xf32> to vector<17x128xf32>
    %26 = arith.mulf %14, %25 : vector<17x128xf32>
    %27 = vector.broadcast %7 : vector<1x128xf32> to vector<17x128xf32>
    %28 = arith.mulf %26, %27 : vector<17x128xf32>
    %29 = vector.broadcast %8 : vector<1x128xf32> to vector<17x128xf32>
    %30 = arith.addf %28, %29 : vector<17x128xf32>
    %31 = arith.truncf %30 : vector<17x128xf32> to vector<17x128xbf16>
    %c0_10 = arith.constant 0 : index
    %c0_11 = arith.constant 0 : index
    %32 = vector.load %arg4[%c0_10, %c0_11] : memref<128x384xbf16, #tpu.memory_space<vmem>>, vector<128x384xbf16>
    %cst_12 = arith.constant dense<0.000000e+00> : vector<17x384xf32>
    %33 = tpu.matmul %31, %32, %cst_12 {dimension_numbers = #tpu.dot_dimension_numbers<[1], [0], [0], [1], [0, 0, 1, 1], [], []>} : vector<17x128xbf16>, vector<128x384xbf16>, vector<17x384xf32> -> vector<17x384xf32>
    %c0_13 = arith.constant 0 : index
    %c0_14 = arith.constant 0 : index
    %34 = vector.load %arg5[%c0_13, %c0_14] : memref<1x384xf32, #tpu.memory_space<vmem>>, vector<1x384xf32>
    %35 = vector.broadcast %34 : vector<1x384xf32> to vector<17x384xf32>
    %36 = arith.addf %33, %35 : vector<17x384xf32>
    %c0_15 = arith.constant 0 : index
    %c0_16 = arith.constant 0 : index
    %37 = vector.load %arg6[%c0_15, %c0_16] : memref<32x128xbf16, #tpu.memory_space<vmem>>, vector<32x128xbf16>
    %cst_17 = arith.constant 0.000000e+00 : f32
    %38 = vector.broadcast %cst_17 : f32 to vector<17x128xf32>
    %39 = vector.extract_strided_slice %36 {offsets = [0, 0], sizes = [17, 8], strides = [1, 1]} : vector<17x384xf32> to vector<17x8xf32>
    %40 = vector.extract_strided_slice %36 {offsets = [0, 128], sizes = [17, 8], strides = [1, 1]} : vector<17x384xf32> to vector<17x8xf32>
    %41 = vector.extract_strided_slice %36 {offsets = [0, 256], sizes = [17, 8], strides = [1, 1]} : vector<17x384xf32> to vector<17x8xf32>
    %cst_18 = arith.constant dense<0.000000e+00> : vector<17x17xf32>
    %42 = tpu.matmul %39, %40, %cst_18 {dimension_numbers = #tpu.dot_dimension_numbers<[1], [1], [0], [0], [0, 0, 1, 0], [], []>} : vector<17x8xf32>, vector<17x8xf32>, vector<17x17xf32> -> vector<17x17xf32>
    %cst_19 = arith.constant dense<0xFF800000> : vector<17xf32>
    %43 = vector.multi_reduction <maximumf>, %42, %cst_19 [1] : vector<17x17xf32> to vector<17xf32>
    %44 = vector.shape_cast %43 : vector<17xf32> to vector<17x1xf32>
    %45 = vector.broadcast %44 : vector<17x1xf32> to vector<17x17xf32>
    %46 = arith.subf %42, %45 : vector<17x17xf32>
    %47 = math.exp %46 : vector<17x17xf32>
    %cst_20 = arith.constant dense<0.000000e+00> : vector<17xf32>
    %48 = vector.multi_reduction <add>, %47, %cst_20 [1] : vector<17x17xf32> to vector<17xf32>
    %49 = vector.shape_cast %48 : vector<17xf32> to vector<17x1xf32>
    %50 = tpu.reciprocal %49 {approx = true} : vector<17x1xf32> -> vector<17x1xf32>
    %51 = vector.broadcast %50 : vector<17x1xf32> to vector<17x17xf32>
    %52 = arith.mulf %47, %51 : vector<17x17xf32>
    %53 = arith.truncf %52 : vector<17x17xf32> to vector<17x17xbf16>
    %54 = arith.truncf %41 : vector<17x8xf32> to vector<17x8xbf16>
    %cst_21 = arith.constant dense<0.000000e+00> : vector<17x8xf32>
    %55 = tpu.matmul %53, %54, %cst_21 {dimension_numbers = #tpu.dot_dimension_numbers<[1], [0], [0], [1], [0, 0, 1, 1], [], []>} : vector<17x17xbf16>, vector<17x8xbf16>, vector<17x8xf32> -> vector<17x8xf32>
    %56 = arith.truncf %55 : vector<17x8xf32> to vector<17x8xbf16>
    %57 = vector.extract_strided_slice %37 {offsets = [0, 0], sizes = [8, 128], strides = [1, 1]} : vector<32x128xbf16> to vector<8x128xbf16>
    %cst_22 = arith.constant dense<0.000000e+00> : vector<17x128xf32>
    %58 = tpu.matmul %56, %57, %cst_22 {dimension_numbers = #tpu.dot_dimension_numbers<[1], [0], [0], [1], [0, 0, 1, 1], [], []>} : vector<17x8xbf16>, vector<8x128xbf16>, vector<17x128xf32> -> vector<17x128xf32>
    %59 = arith.addf %38, %58 : vector<17x128xf32>
    %60 = vector.extract_strided_slice %52 {offsets = [0, 0], sizes = [1, 17], strides = [1, 1]} : vector<17x17xf32> to vector<1x17xf32>
    %61 = vector.extract_strided_slice %36 {offsets = [0, 8], sizes = [17, 8], strides = [1, 1]} : vector<17x384xf32> to vector<17x8xf32>
    %62 = vector.extract_strided_slice %36 {offsets = [0, 136], sizes = [17, 8], strides = [1, 1]} : vector<17x384xf32> to vector<17x8xf32>
    %63 = vector.extract_strided_slice %36 {offsets = [0, 264], sizes = [17, 8], strides = [1, 1]} : vector<17x384xf32> to vector<17x8xf32>
    %cst_23 = arith.constant dense<0.000000e+00> : vector<17x17xf32>
    %64 = tpu.matmul %61, %62, %cst_23 {dimension_numbers = #tpu.dot_dimension_numbers<[1], [1], [0], [0], [0, 0, 1, 0], [], []>} : vector<17x8xf32>, vector<17x8xf32>, vector<17x17xf32> -> vector<17x17xf32>
    %cst_24 = arith.constant dense<0xFF800000> : vector<17xf32>
    %65 = vector.multi_reduction <maximumf>, %64, %cst_24 [1] : vector<17x17xf32> to vector<17xf32>
    %66 = vector.shape_cast %65 : vector<17xf32> to vector<17x1xf32>
    %67 = vector.broadcast %66 : vector<17x1xf32> to vector<17x17xf32>
    %68 = arith.subf %64, %67 : vector<17x17xf32>
    %69 = math.exp %68 : vector<17x17xf32>
    %cst_25 = arith.constant dense<0.000000e+00> : vector<17xf32>
    %70 = vector.multi_reduction <add>, %69, %cst_25 [1] : vector<17x17xf32> to vector<17xf32>
    %71 = vector.shape_cast %70 : vector<17xf32> to vector<17x1xf32>
    %72 = tpu.reciprocal %71 {approx = true} : vector<17x1xf32> -> vector<17x1xf32>
    %73 = vector.broadcast %72 : vector<17x1xf32> to vector<17x17xf32>
    %74 = arith.mulf %69, %73 : vector<17x17xf32>
    %75 = arith.truncf %74 : vector<17x17xf32> to vector<17x17xbf16>
    %76 = arith.truncf %63 : vector<17x8xf32> to vector<17x8xbf16>
    %cst_26 = arith.constant dense<0.000000e+00> : vector<17x8xf32>
    %77 = tpu.matmul %75, %76, %cst_26 {dimension_numbers = #tpu.dot_dimension_numbers<[1], [0], [0], [1], [0, 0, 1, 1], [], []>} : vector<17x17xbf16>, vector<17x8xbf16>, vector<17x8xf32> -> vector<17x8xf32>
    %78 = arith.truncf %77 : vector<17x8xf32> to vector<17x8xbf16>
    %79 = vector.extract_strided_slice %37 {offsets = [8, 0], sizes = [8, 128], strides = [1, 1]} : vector<32x128xbf16> to vector<8x128xbf16>
    %cst_27 = arith.constant dense<0.000000e+00> : vector<17x128xf32>
    %80 = tpu.matmul %78, %79, %cst_27 {dimension_numbers = #tpu.dot_dimension_numbers<[1], [0], [0], [1], [0, 0, 1, 1], [], []>} : vector<17x8xbf16>, vector<8x128xbf16>, vector<17x128xf32> -> vector<17x128xf32>
    %81 = arith.addf %59, %80 : vector<17x128xf32>
    %82 = vector.extract_strided_slice %74 {offsets = [0, 0], sizes = [1, 17], strides = [1, 1]} : vector<17x17xf32> to vector<1x17xf32>
    %83 = vector.extract_strided_slice %36 {offsets = [0, 16], sizes = [17, 8], strides = [1, 1]} : vector<17x384xf32> to vector<17x8xf32>
    %84 = vector.extract_strided_slice %36 {offsets = [0, 144], sizes = [17, 8], strides = [1, 1]} : vector<17x384xf32> to vector<17x8xf32>
    %85 = vector.extract_strided_slice %36 {offsets = [0, 272], sizes = [17, 8], strides = [1, 1]} : vector<17x384xf32> to vector<17x8xf32>
    %cst_28 = arith.constant dense<0.000000e+00> : vector<17x17xf32>
    %86 = tpu.matmul %83, %84, %cst_28 {dimension_numbers = #tpu.dot_dimension_numbers<[1], [1], [0], [0], [0, 0, 1, 0], [], []>} : vector<17x8xf32>, vector<17x8xf32>, vector<17x17xf32> -> vector<17x17xf32>
    %cst_29 = arith.constant dense<0xFF800000> : vector<17xf32>
    %87 = vector.multi_reduction <maximumf>, %86, %cst_29 [1] : vector<17x17xf32> to vector<17xf32>
    %88 = vector.shape_cast %87 : vector<17xf32> to vector<17x1xf32>
    %89 = vector.broadcast %88 : vector<17x1xf32> to vector<17x17xf32>
    %90 = arith.subf %86, %89 : vector<17x17xf32>
    %91 = math.exp %90 : vector<17x17xf32>
    %cst_30 = arith.constant dense<0.000000e+00> : vector<17xf32>
    %92 = vector.multi_reduction <add>, %91, %cst_30 [1] : vector<17x17xf32> to vector<17xf32>
    %93 = vector.shape_cast %92 : vector<17xf32> to vector<17x1xf32>
    %94 = tpu.reciprocal %93 {approx = true} : vector<17x1xf32> -> vector<17x1xf32>
    %95 = vector.broadcast %94 : vector<17x1xf32> to vector<17x17xf32>
    %96 = arith.mulf %91, %95 : vector<17x17xf32>
    %97 = arith.truncf %96 : vector<17x17xf32> to vector<17x17xbf16>
    %98 = arith.truncf %85 : vector<17x8xf32> to vector<17x8xbf16>
    %cst_31 = arith.constant dense<0.000000e+00> : vector<17x8xf32>
    %99 = tpu.matmul %97, %98, %cst_31 {dimension_numbers = #tpu.dot_dimension_numbers<[1], [0], [0], [1], [0, 0, 1, 1], [], []>} : vector<17x17xbf16>, vector<17x8xbf16>, vector<17x8xf32> -> vector<17x8xf32>
    %100 = arith.truncf %99 : vector<17x8xf32> to vector<17x8xbf16>
    %101 = vector.extract_strided_slice %37 {offsets = [16, 0], sizes = [8, 128], strides = [1, 1]} : vector<32x128xbf16> to vector<8x128xbf16>
    %cst_32 = arith.constant dense<0.000000e+00> : vector<17x128xf32>
    %102 = tpu.matmul %100, %101, %cst_32 {dimension_numbers = #tpu.dot_dimension_numbers<[1], [0], [0], [1], [0, 0, 1, 1], [], []>} : vector<17x8xbf16>, vector<8x128xbf16>, vector<17x128xf32> -> vector<17x128xf32>
    %103 = arith.addf %81, %102 : vector<17x128xf32>
    %104 = vector.extract_strided_slice %96 {offsets = [0, 0], sizes = [1, 17], strides = [1, 1]} : vector<17x17xf32> to vector<1x17xf32>
    %105 = vector.extract_strided_slice %36 {offsets = [0, 24], sizes = [17, 8], strides = [1, 1]} : vector<17x384xf32> to vector<17x8xf32>
    %106 = vector.extract_strided_slice %36 {offsets = [0, 152], sizes = [17, 8], strides = [1, 1]} : vector<17x384xf32> to vector<17x8xf32>
    %107 = vector.extract_strided_slice %36 {offsets = [0, 280], sizes = [17, 8], strides = [1, 1]} : vector<17x384xf32> to vector<17x8xf32>
    %cst_33 = arith.constant dense<0.000000e+00> : vector<17x17xf32>
    %108 = tpu.matmul %105, %106, %cst_33 {dimension_numbers = #tpu.dot_dimension_numbers<[1], [1], [0], [0], [0, 0, 1, 0], [], []>} : vector<17x8xf32>, vector<17x8xf32>, vector<17x17xf32> -> vector<17x17xf32>
    %cst_34 = arith.constant dense<0xFF800000> : vector<17xf32>
    %109 = vector.multi_reduction <maximumf>, %108, %cst_34 [1] : vector<17x17xf32> to vector<17xf32>
    %110 = vector.shape_cast %109 : vector<17xf32> to vector<17x1xf32>
    %111 = vector.broadcast %110 : vector<17x1xf32> to vector<17x17xf32>
    %112 = arith.subf %108, %111 : vector<17x17xf32>
    %113 = math.exp %112 : vector<17x17xf32>
    %cst_35 = arith.constant dense<0.000000e+00> : vector<17xf32>
    %114 = vector.multi_reduction <add>, %113, %cst_35 [1] : vector<17x17xf32> to vector<17xf32>
    %115 = vector.shape_cast %114 : vector<17xf32> to vector<17x1xf32>
    %116 = tpu.reciprocal %115 {approx = true} : vector<17x1xf32> -> vector<17x1xf32>
    %117 = vector.broadcast %116 : vector<17x1xf32> to vector<17x17xf32>
    %118 = arith.mulf %113, %117 : vector<17x17xf32>
    %119 = arith.truncf %118 : vector<17x17xf32> to vector<17x17xbf16>
    %120 = arith.truncf %107 : vector<17x8xf32> to vector<17x8xbf16>
    %cst_36 = arith.constant dense<0.000000e+00> : vector<17x8xf32>
    %121 = tpu.matmul %119, %120, %cst_36 {dimension_numbers = #tpu.dot_dimension_numbers<[1], [0], [0], [1], [0, 0, 1, 1], [], []>} : vector<17x17xbf16>, vector<17x8xbf16>, vector<17x8xf32> -> vector<17x8xf32>
    %122 = arith.truncf %121 : vector<17x8xf32> to vector<17x8xbf16>
    %123 = vector.extract_strided_slice %37 {offsets = [24, 0], sizes = [8, 128], strides = [1, 1]} : vector<32x128xbf16> to vector<8x128xbf16>
    %cst_37 = arith.constant dense<0.000000e+00> : vector<17x128xf32>
    %124 = tpu.matmul %122, %123, %cst_37 {dimension_numbers = #tpu.dot_dimension_numbers<[1], [0], [0], [1], [0, 0, 1, 1], [], []>} : vector<17x8xbf16>, vector<8x128xbf16>, vector<17x128xf32> -> vector<17x128xf32>
    %125 = arith.addf %103, %124 : vector<17x128xf32>
    %126 = vector.extract_strided_slice %118 {offsets = [0, 0], sizes = [1, 17], strides = [1, 1]} : vector<17x17xf32> to vector<1x17xf32>
    %127 = arith.addf %6, %125 : vector<17x128xf32>
    %c0_38 = arith.constant 0 : index
    %c0_39 = arith.constant 0 : index
    %128 = vector.load %arg7[%c0_38, %c0_39] : memref<1x128xf32, #tpu.memory_space<vmem>>, vector<1x128xf32>
    %129 = vector.broadcast %128 : vector<1x128xf32> to vector<17x128xf32>
    %130 = arith.addf %127, %129 : vector<17x128xf32>
    %c0_40 = arith.constant 0 : index
    %c0_41 = arith.constant 0 : index
    %131 = vector.load %arg8[%c0_40, %c0_41] : memref<1x128xf32, #tpu.memory_space<vmem>>, vector<1x128xf32>
    %c0_42 = arith.constant 0 : index
    %c0_43 = arith.constant 0 : index
    %132 = vector.load %arg9[%c0_42, %c0_43] : memref<1x128xf32, #tpu.memory_space<vmem>>, vector<1x128xf32>
    %cst_44 = arith.constant dense<0.000000e+00> : vector<17xf32>
    %133 = vector.multi_reduction <add>, %130, %cst_44 [1] : vector<17x128xf32> to vector<17xf32>
    %134 = vector.shape_cast %133 : vector<17xf32> to vector<17x1xf32>
    %cst_45 = arith.constant 3.125000e-02 : f32
    %135 = vector.broadcast %cst_45 : f32 to vector<17x1xf32>
    %136 = arith.mulf %134, %135 : vector<17x1xf32>
    %137 = vector.broadcast %136 : vector<17x1xf32> to vector<17x128xf32>
    %138 = arith.subf %130, %137 : vector<17x128xf32>
    %139 = vector.broadcast %4 : vector<1x128xf32> to vector<17x128xf32>
    %140 = arith.mulf %138, %139 : vector<17x128xf32>
    %141 = arith.mulf %140, %140 : vector<17x128xf32>
    %cst_46 = arith.constant dense<0.000000e+00> : vector<17xf32>
    %142 = vector.multi_reduction <add>, %141, %cst_46 [1] : vector<17x128xf32> to vector<17xf32>
    %143 = vector.shape_cast %142 : vector<17xf32> to vector<17x1xf32>
    %cst_47 = arith.constant 3.125000e-02 : f32
    %144 = vector.broadcast %cst_47 : f32 to vector<17x1xf32>
    %145 = arith.mulf %143, %144 : vector<17x1xf32>
    %cst_48 = arith.constant 9.99999974E-6 : f32
    %146 = vector.broadcast %cst_48 : f32 to vector<17x1xf32>
    %147 = arith.addf %145, %146 : vector<17x1xf32>
    %148 = math.rsqrt %147 : vector<17x1xf32>
    %149 = vector.broadcast %148 : vector<17x1xf32> to vector<17x128xf32>
    %150 = arith.mulf %138, %149 : vector<17x128xf32>
    %151 = vector.broadcast %131 : vector<1x128xf32> to vector<17x128xf32>
    %152 = arith.mulf %150, %151 : vector<17x128xf32>
    %153 = vector.broadcast %132 : vector<1x128xf32> to vector<17x128xf32>
    %154 = arith.addf %152, %153 : vector<17x128xf32>
    %155 = arith.truncf %154 : vector<17x128xf32> to vector<17x128xbf16>
    %c0_49 = arith.constant 0 : index
    %c0_50 = arith.constant 0 : index
    %156 = vector.load %arg10[%c0_49, %c0_50] : memref<128x128xbf16, #tpu.memory_space<vmem>>, vector<128x128xbf16>
    %cst_51 = arith.constant dense<0.000000e+00> : vector<17x128xf32>
    %157 = tpu.matmul %155, %156, %cst_51 {dimension_numbers = #tpu.dot_dimension_numbers<[1], [0], [0], [1], [0, 0, 1, 1], [], []>} : vector<17x128xbf16>, vector<128x128xbf16>, vector<17x128xf32> -> vector<17x128xf32>
    %c0_52 = arith.constant 0 : index
    %c0_53 = arith.constant 0 : index
    %158 = vector.load %arg11[%c0_52, %c0_53] : memref<1x128xf32, #tpu.memory_space<vmem>>, vector<1x128xf32>
    %159 = vector.broadcast %158 : vector<1x128xf32> to vector<17x128xf32>
    %160 = arith.addf %157, %159 : vector<17x128xf32>
    %cst_54 = arith.constant 1.702000e+00 : f32
    %161 = vector.broadcast %cst_54 : f32 to vector<17x128xf32>
    %162 = arith.mulf %161, %160 : vector<17x128xf32>
    %163 = arith.negf %162 : vector<17x128xf32>
    %164 = math.exp %163 : vector<17x128xf32>
    %cst_55 = arith.constant 1.000000e+00 : f32
    %165 = vector.broadcast %cst_55 : f32 to vector<17x128xf32>
    %166 = arith.addf %165, %164 : vector<17x128xf32>
    %167 = arith.divf %165, %166 : vector<17x128xf32>
    %168 = arith.mulf %160, %167 : vector<17x128xf32>
    %169 = arith.truncf %168 : vector<17x128xf32> to vector<17x128xbf16>
    %c0_56 = arith.constant 0 : index
    %c0_57 = arith.constant 0 : index
    %170 = vector.load %arg12[%c0_56, %c0_57] : memref<128x128xbf16, #tpu.memory_space<vmem>>, vector<128x128xbf16>
    %cst_58 = arith.constant dense<0.000000e+00> : vector<17x128xf32>
    %171 = tpu.matmul %169, %170, %cst_58 {dimension_numbers = #tpu.dot_dimension_numbers<[1], [0], [0], [1], [0, 0, 1, 1], [], []>} : vector<17x128xbf16>, vector<128x128xbf16>, vector<17x128xf32> -> vector<17x128xf32>
    %c0_59 = arith.constant 0 : index
    %c0_60 = arith.constant 0 : index
    %172 = vector.load %arg13[%c0_59, %c0_60] : memref<1x128xf32, #tpu.memory_space<vmem>>, vector<1x128xf32>
    %173 = vector.broadcast %172 : vector<1x128xf32> to vector<17x128xf32>
    %174 = arith.addf %171, %173 : vector<17x128xf32>
    %175 = arith.addf %130, %174 : vector<17x128xf32>
    %c0_61 = arith.constant 0 : index
    %c0_62 = arith.constant 0 : index
    %c0_63 = arith.constant 0 : index
    %176 = vector.load %arg14[%c0_61, %c0_62, %c0_63] : memref<1x17x128xf32, #tpu.memory_space<vmem>>, vector<1x17x128xf32>
    %177 = vector.shape_cast %176 : vector<1x17x128xf32> to vector<17x128xf32>
    %178 = vector.shape_cast %175 : vector<17x128xf32> to vector<1x17x128xf32>
    tpu.vector_store %arg14[%c0_61, %c0_62, %c0_63], %178 {strides = array<i32>} : memref<1x17x128xf32, #tpu.memory_space<vmem>>, vector<1x17x128xf32>,
    %179 = tpu.concatenate %60, %82, %104, %126 in 0 : vector<1x17xf32>, vector<1x17xf32>, vector<1x17xf32>, vector<1x17xf32> -> vector<4x17xf32>
    %c0_64 = arith.constant 0 : index
    %c0_65 = arith.constant 0 : index
    %c0_66 = arith.constant 0 : index
    %180 = vector.load %arg15[%c0_64, %c0_65, %c0_66] : memref<1x4x17xf32, #tpu.memory_space<vmem>>, vector<1x4x17xf32>
    %181 = vector.shape_cast %180 : vector<1x4x17xf32> to vector<4x17xf32>
    %182 = vector.shape_cast %179 : vector<4x17xf32> to vector<1x4x17xf32>
    tpu.vector_store %arg15[%c0_64, %c0_65, %c0_66], %182 {strides = array<i32>} : memref<1x4x17xf32, #tpu.memory_space<vmem>>, vector<1x4x17xf32>,
    return
  }
  func.func @transform_0(%arg0: i32) -> (i32, i32, i32) {
    %c0_i32 = arith.constant 0 : i32
    %c0_i32_0 = arith.constant 0 : i32
    %c0_i32_1 = arith.constant 0 : i32
    return %arg0, %c0_i32, %c0_i32_0 : i32, i32, i32
  }
  func.func @transform_1(%arg0: i32) -> (i32, i32) {
    %c0_i32 = arith.constant 0 : i32
    %c0_i32_0 = arith.constant 0 : i32
    %c0_i32_1 = arith.constant 0 : i32
    return %c0_i32, %c0_i32_0 : i32, i32
  }
  func.func @transform_2(%arg0: i32) -> (i32, i32) {
    %c0_i32 = arith.constant 0 : i32
    %c0_i32_0 = arith.constant 0 : i32
    %c0_i32_1 = arith.constant 0 : i32
    return %c0_i32, %c0_i32_0 : i32, i32
  }
  func.func @transform_3(%arg0: i32) -> (i32, i32) {
    %c0_i32 = arith.constant 0 : i32
    %c0_i32_0 = arith.constant 0 : i32
    %c0_i32_1 = arith.constant 0 : i32
    return %c0_i32, %c0_i32_0 : i32, i32
  }
  func.func @transform_4(%arg0: i32) -> (i32, i32) {
    %c0_i32 = arith.constant 0 : i32
    %c0_i32_0 = arith.constant 0 : i32
    %c0_i32_1 = arith.constant 0 : i32
    return %c0_i32, %c0_i32_0 : i32, i32
  }
  func.func @transform_5(%arg0: i32) -> (i32, i32) {
    %c0_i32 = arith.constant 0 : i32
    %c0_i32_0 = arith.constant 0 : i32
    %c0_i32_1 = arith.constant 0 : i32
    return %c0_i32, %c0_i32_0 : i32, i32
  }
  func.func @transform_6(%arg0: i32) -> (i32, i32) {
    %c0_i32 = arith.constant 0 : i32
    %c0_i32_0 = arith.constant 0 : i32
    %c0_i32_1 = arith.constant 0 : i32
    return %c0_i32, %c0_i32_0 : i32, i32
  }
  func.func @transform_7(%arg0: i32) -> (i32, i32) {
    %c0_i32 = arith.constant 0 : i32
    %c0_i32_0 = arith.constant 0 : i32
    %c0_i32_1 = arith.constant 0 : i32
    return %c0_i32, %c0_i32_0 : i32, i32
  }
  func.func @transform_8(%arg0: i32) -> (i32, i32) {
    %c0_i32 = arith.constant 0 : i32
    %c0_i32_0 = arith.constant 0 : i32
    %c0_i32_1 = arith.constant 0 : i32
    return %c0_i32, %c0_i32_0 : i32, i32
  }
  func.func @transform_9(%arg0: i32) -> (i32, i32) {
    %c0_i32 = arith.constant 0 : i32
    %c0_i32_0 = arith.constant 0 : i32
    %c0_i32_1 = arith.constant 0 : i32
    return %c0_i32, %c0_i32_0 : i32, i32
  }
  func.func @transform_10(%arg0: i32) -> (i32, i32) {
    %c0_i32 = arith.constant 0 : i32
    %c0_i32_0 = arith.constant 0 : i32
    %c0_i32_1 = arith.constant 0 : i32
    return %c0_i32, %c0_i32_0 : i32, i32
  }
  func.func @transform_11(%arg0: i32) -> (i32, i32) {
    %c0_i32 = arith.constant 0 : i32
    %c0_i32_0 = arith.constant 0 : i32
    %c0_i32_1 = arith.constant 0 : i32
    return %c0_i32, %c0_i32_0 : i32, i32
  }
  func.func @transform_12(%arg0: i32) -> (i32, i32) {
    %c0_i32 = arith.constant 0 : i32
    %c0_i32_0 = arith.constant 0 : i32
    %c0_i32_1 = arith.constant 0 : i32
    return %c0_i32, %c0_i32_0 : i32, i32
  }
  func.func @transform_13(%arg0: i32) -> (i32, i32, i32) {
    %c0_i32 = arith.constant 0 : i32
    %c0_i32_0 = arith.constant 0 : i32
    %c0_i32_1 = arith.constant 0 : i32
    return %arg0, %c0_i32, %c0_i32_0 : i32, i32, i32
  }
  func.func @transform_14(%arg0: i32) -> (i32, i32, i32) {
    %c0_i32 = arith.constant 0 : i32
    %c0_i32_0 = arith.constant 0 : i32
    %c0_i32_1 = arith.constant 0 : i32
    return %arg0, %c0_i32, %c0_i32_0 : i32, i32, i32
  }
}

module attributes {stable_mosaic.version = 11 : i64} {
  func.func @_embed_kernel(%arg0: i32, %arg1: memref<1x17x192xf32, #tpu.memory_space<vmem>>, %arg2: memref<192x128xbf16, #tpu.memory_space<vmem>>, %arg3: memref<17x128xf32, #tpu.memory_space<vmem>>, %arg4: memref<1x128xf32, #tpu.memory_space<vmem>>, %arg5: memref<1x128xf32, #tpu.memory_space<vmem>>, %arg6: memref<1x17x128xf32, #tpu.memory_space<vmem>>) attributes {dimension_semantics = [#tpu.dimension_semantics<parallel>], iteration_bounds = array<i64: 2>, scalar_prefetch = 0 : i64, scratch_operands = 0 : i64, tpu.core_type = #tpu.core_type<tc>, window_params = [{transform_indices = @transform_0, window_bounds = array<i64: 1, 17, 192>}, {pipeline_mode = #tpu.pipeline_mode<synchronous>, transform_indices = @transform_1, window_bounds = array<i64: 192, 128>}, {pipeline_mode = #tpu.pipeline_mode<synchronous>, transform_indices = @transform_2, window_bounds = array<i64: 17, 128>}, {pipeline_mode = #tpu.pipeline_mode<synchronous>, transform_indices = @transform_3, window_bounds = array<i64: 1, 128>}, {pipeline_mode = #tpu.pipeline_mode<synchronous>, transform_indices = @transform_4, window_bounds = array<i64: 1, 128>}, {transform_indices = @transform_5, window_bounds = array<i64: 1, 17, 128>}]} {
    %c0 = arith.constant 0 : index
    %c0_0 = arith.constant 0 : index
    %c0_1 = arith.constant 0 : index
    %0 = vector.load %arg1[%c0, %c0_0, %c0_1] : memref<1x17x192xf32, #tpu.memory_space<vmem>>, vector<1x17x192xf32>
    %1 = vector.shape_cast %0 : vector<1x17x192xf32> to vector<17x192xf32>
    %2 = arith.truncf %1 : vector<17x192xf32> to vector<17x192xbf16>
    %c0_2 = arith.constant 0 : index
    %c0_3 = arith.constant 0 : index
    %3 = vector.load %arg2[%c0_2, %c0_3] : memref<192x128xbf16, #tpu.memory_space<vmem>>, vector<192x128xbf16>
    %cst = arith.constant dense<0.000000e+00> : vector<17x128xf32>
    %4 = tpu.matmul %2, %3, %cst {dimension_numbers = #tpu.dot_dimension_numbers<[1], [0], [0], [1], [0, 0, 1, 1], [], []>} : vector<17x192xbf16>, vector<192x128xbf16>, vector<17x128xf32> -> vector<17x128xf32>
    %c0_4 = arith.constant 0 : index
    %c0_5 = arith.constant 0 : index
    %5 = vector.load %arg3[%c0_4, %c0_5] : memref<17x128xf32, #tpu.memory_space<vmem>>, vector<17x128xf32>
    %6 = arith.addf %4, %5 : vector<17x128xf32>
    %c0_6 = arith.constant 0 : index
    %c0_7 = arith.constant 0 : index
    %7 = vector.load %arg4[%c0_6, %c0_7] : memref<1x128xf32, #tpu.memory_space<vmem>>, vector<1x128xf32>
    %c0_8 = arith.constant 0 : index
    %c0_9 = arith.constant 0 : index
    %8 = vector.load %arg5[%c0_8, %c0_9] : memref<1x128xf32, #tpu.memory_space<vmem>>, vector<1x128xf32>
    %9 = tpu.iota {dimensions = array<i32: 1>} : vector<1x128xi32>
    %c32_i32 = arith.constant 32 : i32
    %10 = vector.broadcast %c32_i32 : i32 to vector<1x128xi32>
    %11 = arith.cmpi slt, %9, %10 : vector<1x128xi32>
    %12 = arith.extui %11 : vector<1x128xi1> to vector<1x128xi32>
    %13 = arith.sitofp %12 : vector<1x128xi32> to vector<1x128xf32>
    %cst_10 = arith.constant dense<0.000000e+00> : vector<17xf32>
    %14 = vector.multi_reduction <add>, %6, %cst_10 [1] : vector<17x128xf32> to vector<17xf32>
    %15 = vector.shape_cast %14 : vector<17xf32> to vector<17x1xf32>
    %cst_11 = arith.constant 3.125000e-02 : f32
    %16 = vector.broadcast %cst_11 : f32 to vector<17x1xf32>
    %17 = arith.mulf %15, %16 : vector<17x1xf32>
    %18 = vector.broadcast %17 : vector<17x1xf32> to vector<17x128xf32>
    %19 = arith.subf %6, %18 : vector<17x128xf32>
    %20 = vector.broadcast %13 : vector<1x128xf32> to vector<17x128xf32>
    %21 = arith.mulf %19, %20 : vector<17x128xf32>
    %22 = arith.mulf %21, %21 : vector<17x128xf32>
    %cst_12 = arith.constant dense<0.000000e+00> : vector<17xf32>
    %23 = vector.multi_reduction <add>, %22, %cst_12 [1] : vector<17x128xf32> to vector<17xf32>
    %24 = vector.shape_cast %23 : vector<17xf32> to vector<17x1xf32>
    %cst_13 = arith.constant 3.125000e-02 : f32
    %25 = vector.broadcast %cst_13 : f32 to vector<17x1xf32>
    %26 = arith.mulf %24, %25 : vector<17x1xf32>
    %cst_14 = arith.constant 9.99999974E-6 : f32
    %27 = vector.broadcast %cst_14 : f32 to vector<17x1xf32>
    %28 = arith.addf %26, %27 : vector<17x1xf32>
    %29 = math.rsqrt %28 : vector<17x1xf32>
    %30 = vector.broadcast %29 : vector<17x1xf32> to vector<17x128xf32>
    %31 = arith.mulf %19, %30 : vector<17x128xf32>
    %32 = vector.broadcast %7 : vector<1x128xf32> to vector<17x128xf32>
    %33 = arith.mulf %31, %32 : vector<17x128xf32>
    %34 = vector.broadcast %8 : vector<1x128xf32> to vector<17x128xf32>
    %35 = arith.addf %33, %34 : vector<17x128xf32>
    %c0_15 = arith.constant 0 : index
    %c0_16 = arith.constant 0 : index
    %c0_17 = arith.constant 0 : index
    %36 = vector.load %arg6[%c0_15, %c0_16, %c0_17] : memref<1x17x128xf32, #tpu.memory_space<vmem>>, vector<1x17x128xf32>
    %37 = vector.shape_cast %36 : vector<1x17x128xf32> to vector<17x128xf32>
    %38 = vector.shape_cast %35 : vector<17x128xf32> to vector<1x17x128xf32>
    tpu.vector_store %arg6[%c0_15, %c0_16, %c0_17], %38 {strides = array<i32>} : memref<1x17x128xf32, #tpu.memory_space<vmem>>, vector<1x17x128xf32>,
    return
  }
  func.func @transform_0(%arg0: i32) -> (i32, i32, i32) {
    %c0_i32 = arith.constant 0 : i32
    %c0_i32_0 = arith.constant 0 : i32
    %c0_i32_1 = arith.constant 0 : i32
    return %arg0, %c0_i32, %c0_i32_0 : i32, i32, i32
  }
  func.func @transform_1(%arg0: i32) -> (i32, i32) {
    %c0_i32 = arith.constant 0 : i32
    %c0_i32_0 = arith.constant 0 : i32
    %c0_i32_1 = arith.constant 0 : i32
    return %c0_i32, %c0_i32_0 : i32, i32
  }
  func.func @transform_2(%arg0: i32) -> (i32, i32) {
    %c0_i32 = arith.constant 0 : i32
    %c0_i32_0 = arith.constant 0 : i32
    %c0_i32_1 = arith.constant 0 : i32
    return %c0_i32, %c0_i32_0 : i32, i32
  }
  func.func @transform_3(%arg0: i32) -> (i32, i32) {
    %c0_i32 = arith.constant 0 : i32
    %c0_i32_0 = arith.constant 0 : i32
    %c0_i32_1 = arith.constant 0 : i32
    return %c0_i32, %c0_i32_0 : i32, i32
  }
  func.func @transform_4(%arg0: i32) -> (i32, i32) {
    %c0_i32 = arith.constant 0 : i32
    %c0_i32_0 = arith.constant 0 : i32
    %c0_i32_1 = arith.constant 0 : i32
    return %c0_i32, %c0_i32_0 : i32, i32
  }
  func.func @transform_5(%arg0: i32) -> (i32, i32, i32) {
    %c0_i32 = arith.constant 0 : i32
    %c0_i32_0 = arith.constant 0 : i32
    %c0_i32_1 = arith.constant 0 : i32
    return %arg0, %c0_i32, %c0_i32_0 : i32, i32, i32
  }
}

</mosaic_0001>

<bundles_post_ra>
// kernel: vision_tower_forward.2
= control target key start
LH: loop header
LB: loop body
LE: loop exit
PB: predicated region body
PF: predicated region fallthrough
CT: control target
= control target key end

     0   :  { %s632_s18 = smov 0   ;;  %s738_s0 = inlined_call_operand.vmem [shape: f32[2,17,192], index: 0, kind: input, shape index: {}]   ;;  %s739_s1 = inlined_call_operand.vmem [shape: bf16[192,128], index: 1, kind: input, shape index: {}]   ;;  %s740_s2 = inlined_call_operand.vmem [shape: f32[17,128], index: 2, kind: input, shape index: {}]   ;;  %s741_s3 = inlined_call_operand.vmem [shape: f32[1,128], index: 3, kind: input, shape index: {}]   ;;  %s742_s4 = inlined_call_operand.vmem [shape: f32[1,128], index: 4, kind: input, shape index: {}]   ;;  %s743_s5 = inlined_call_operand.vmem [shape: f32[2,17,128], index: 5, kind: output, shape index: {}]  }
   0x1 LB: > { %s512_s19 = sadd.s32 4294967295, %s598_s18   ;;  %p516_p0 = scmp.ge.s32.totalorder %s598_s18, 1  ;;  %s598_s18 = sphi %s632_s18, %s15_s18  }
   0x2   : > { %p187_p1 = scmp.lt.s32.totalorder %s598_s18, 3 }
   0x4   : > { %p188_p2 = pnand %p516_p0, %p187_p1 }
   0x5   : > { %v574_v0 = vld [vmem:[%s739_s1] sm:$0xff] (!%p188_p2)   ;;  %v600_v1 = vmov (!%p188_p2), 0   ;;  %p215_p3 = scmp.lt.s32.totalorder (!%p188_p2), %s512_s19, 1  ;;  %v575_v2 = vld [vmem:[%s739_s1 + $0x8] sm:$0xff] (!%p188_p2)   ;;  %v576_v3 = vld [vmem:[%s739_s1 + $0x10] sm:$0xff] (!%p188_p2)   ;;  %vm335_vm0 = vcmask (!%p188_p2), 523264   ;;  %v392_v38 = vlaneseq (!%p188_p2) }
   0x6   : > { %191 = sbr.rel (%p188_p2) target bundleno = 591 (0x24f), region = 40  ;;  %342 = vmatprep.subr.bf16.mxu0 (!%p188_p2), %v600_v1  ;;  %538 = vmatprep.subr.bf16.mxu1 (!%p188_p2), %v600_v1  ;;  %v577_v4 = vld [vmem:[%s739_s1 + $0x18] sm:$0xff] (!%p188_p2)   ;;  %v578_v10 = vld [vmem:[%s739_s1 + $0x20] sm:$0xff] (!%p188_p2)   ;;  %v579_v11 = vld [vmem:[%s739_s1 + $0x28] sm:$0xff] (!%p188_p2)   ;;  %vm401_vm1 = vcmask (!%p188_p2), 1040384   ;;  %v601_v44 = vmov (!%p188_p2), 0.0  }
   0x7   : > { %343 = vmatpush1.bf16.msra.mxu0 (!%p188_p2), %v574_v0  ;;  %550 = vmatpush1.bf16.msra.mxu1 (!%p188_p2), %v574_v0  ;;  %v580_v12 = vld [vmem:[%s739_s1 + $0x30] sm:$0xff] (!%p188_p2)   ;;  %v581_v13 = vld [vmem:[%s739_s1 + $0x38] sm:$0xff] (!%p188_p2)   ;;  %v582_v14 = vld [vmem:[%s739_s1 + $0x40] sm:$0xff] (!%p188_p2)   ;;  %v393_v39 = vand.u32 (!%p188_p2), 127, %v392_v38 }
   0x8   : > { %344 = vmatprep.subr.bf16.mxu0 (!%p188_p2), %v600_v1  ;;  %539 = vmatprep.subr.bf16.mxu1 (!%p188_p2), %v600_v1  ;;  %v583_v15 = vld [vmem:[%s739_s1 + $0x48] sm:$0xff] (!%p188_p2)   ;;  %v584_v16 = vld [vmem:[%s739_s1 + $0x50] sm:$0xff] (!%p188_p2)   ;;  %v585_v17 = vld [vmem:[%s739_s1 + $0x58] sm:$0xff] (!%p188_p2)  }
   0x9   : > { %v262_v23 = vld [vmem:[%s740_s2 + $0x10] sm:$0x1] (!%p188_p2)  ;;  %v261_v26 = vld [vmem:[%s740_s2 + $0x8] sm:$0xff] (!%p188_p2)  ;;  %v260_v27 = vld [vmem:[%s740_s2] sm:$0xff] (!%p188_p2)  ;;  %vm394_vm2 = vcmp.lt.s32.totalorder (!%p188_p2), %v393_v39, 32 }
   0xa   : > { %v533_v45 = vsel (!%p188_p2), %vm394_vm2, 1.0, %v601_v44 }
   0xb   : > { %345 = vmatpush1.bf16.msra.mxu0 (!%p188_p2), %v575_v2  ;;  %551 = vmatpush1.bf16.msra.mxu1 (!%p188_p2), %v575_v2 }
   0xc   : > { %346 = vmatprep.subr.bf16.mxu0 (!%p188_p2), %v600_v1  ;;  %540 = vmatprep.subr.bf16.mxu1 (!%p188_p2), %v600_v1 }
   0xd   : > { %s745_s19 = smov (!%p215_p3, %s512_s19), 1 }
   0xe   : > { %s562_s24 = smul.u32 48, %s745_s19 }
   0xf   : > { %347 = vmatpush1.bf16.msra.mxu0 %v576_v3  ;;  %552 = vmatpush1.bf16.msra.mxu1 %v576_v3  ;;  %s563_s6 = smul.u32 24, %s745_s19 }
  0x10   : > { %s661_s29 = scalar_lea.vmem %s738_s0, %s562_s24  ;;  %348 = vmatprep.subr.bf16.mxu0 %v600_v1  ;;  %541 = vmatprep.subr.bf16.mxu1 %v600_v1 }
  0x11   : > { %v227_v5 = vld [vmem:[%s661_s29 + $0x8] sm:$0xff]  ;;  %v229_v6 = vld [vmem:[%s661_s29 + $0x18] sm:$0xff]  ;;  %v226_v18 = vld [vmem:[%s661_s29] sm:$0xff]  ;;  %s224_s13 = scalar_lea.vmem %s743_s5, %s563_s6 }
  0x12   : > { %v231_v7 = vld [vmem:[%s661_s29 + $0x28] sm:$0x1]  ;;  %v233_v8 = vpack.c.bf16 %v229_v6, %v227_v5  ;;  %v228_v19 = vld [vmem:[%s661_s29 + $0x10] sm:$0xff]  ;;  %v230_v20 = vld [vmem:[%s661_s29 + $0x20] sm:$0x1] }
  0x13   : > { %v235_v9 = vpack.c.bf16 %v231_v7, %v231_v7  ;;  %349 = vmatpush1.bf16.msra.mxu0 %v577_v4  ;;  %553 = vmatpush1.bf16.msra.mxu1 %v577_v4  ;;  %v232_v21 = vpack.c.bf16 %v228_v19, %v226_v18  ;;  %v234_v22 = vpack.c.bf16 %v230_v20, %v230_v20  ;;  %v534_v4 = vld [vmem:[%s741_s3] ss:$0 sm:$0xff] }
  0x14   : > { %350 = vmatprep.subr.bf16.mxu0 %v600_v1  ;;  %542 = vmatprep.subr.bf16.mxu1 %v600_v1  ;;  %v535_v6 = vld [vmem:[%s742_s4] ss:$0 sm:$0xff] }
  0x15   : > { %531 = vmatprep.mubr.msk.bf16.mxu0 %vm335_vm0, %v233_v8  ;;  %532 = vmatprep.mubr.msk.bf16.mxu1 %vm335_vm0, %v235_v9 }
  0x17   : > { %351 = vmatpush1.bf16.msra.mxu0 %v578_v10  ;;  %554 = vmatpush1.bf16.msra.mxu1 %v578_v10 }
  0x18   : > { %352 = vmatprep.subr.bf16.mxu0 %v600_v1  ;;  %543 = vmatprep.subr.bf16.mxu1 %v600_v1 }
  0x1b   : > { %353 = vmatpush1.bf16.msra.mxu0 %v579_v11  ;;  %555 = vmatpush1.bf16.msra.mxu1 %v579_v11 }
  0x1c   : > { %354 = vmatprep.subr.bf16.mxu0 %v600_v1  ;;  %544 = vmatprep.subr.bf16.mxu1 %v600_v1 }
  0x1f   : > { %355 = vmatpush1.bf16.msra.mxu0 %v580_v12  ;;  %556 = vmatpush1.bf16.msra.mxu1 %v580_v12 }
  0x20   : > { %356 = vmatprep.subr.bf16.mxu0 %v600_v1  ;;  %545 = vmatprep.subr.bf16.mxu1 %v600_v1 }
  0x23   : > { %357 = vmatpush1.bf16.msra.mxu0 %v581_v13  ;;  %557 = vmatpush1.bf16.msra.mxu1 %v581_v13 }
  0x24   : > { %358 = vmatprep.subr.bf16.mxu0 %v600_v1  ;;  %546 = vmatprep.subr.bf16.mxu1 %v600_v1 }
  0x27   : > { %359 = vmatpush1.bf16.msra.mxu0 %v582_v14  ;;  %558 = vmatpush1.bf16.msra.mxu1 %v582_v14 }
  0x28   : > { %360 = vmatprep.subr.bf16.mxu0 %v600_v1  ;;  %547 = vmatprep.subr.bf16.mxu1 %v600_v1 }
  0x2b   : > { %361 = vmatpush1.bf16.msra.mxu0 %v583_v15  ;;  %559 = vmatpush1.bf16.msra.mxu1 %v583_v15 }
  0x2c   : > { %362 = vmatprep.subr.bf16.mxu0 %v600_v1  ;;  %548 = vmatprep.subr.bf16.mxu1 %v600_v1 }
  0x2f   : > { %363 = vmatpush1.bf16.msra.mxu0 %v584_v16  ;;  %560 = vmatpush1.bf16.msra.mxu1 %v584_v16 }
  0x30   : > { %364 = vmatprep.subr.bf16.mxu0 %v600_v1  ;;  %549 = vmatprep.subr.bf16.mxu1 %v600_v1 }
  0x33   : > { %365 = vmatpush1.bf16.msra.mxu0 %v585_v17  ;;  %561 = vmatpush1.bf16.msra.mxu1 %v585_v17 }
  0x36   : > { %375 = vmatmul.mubr.bf16.vlgmr.msra.gmra.mrb[0].mxu0 %v232_v21  ;;  %383 = vmatmul.mubr.bf16.vlgmr.msra.gmra.mrb[0].mxu1 %v234_v22 }
 0x109   : > { %v376_v24 = vpop.f32.mrb[0].mxu0  ;;  %v384_v25 = vpop.f32.mrb[0].mxu1 }
 0x10a   : > { %v385_v28 = vadd.f32 %v384_v25, %v262_v23  ;;  %v378_v29 = vpop.f32.mrb[1].mxu0  ;;  %v386_v30 = vpop.f32.mrb[1].mxu1  ;;  %v377_v37 = vadd.f32 %v376_v24, %v260_v27 }
 0x10b   : > { %v379_v31 = vpop.f32.mrb[2].mxu0  ;;  %v387_v32 = vpop.f32.mrb[2].mxu1 }
 0x10c   : > { %v380_v33 = vadd.f32 %v379_v31, %v261_v26  ;;  %v388_v34 = vpop.f32.mrb[3].mxu1  ;;  %v402_v35 = vsel %vm401_vm1, %v385_v28, 0.0  ;;  %v381_v36 = vpop.f32.mrb[3].mxu0 }
 0x10d   : > { %403 = vadd.xlane.f32.xlu0 %v402_v35 }
 0x10e   : > { %399 = vadd.xlane.f32.xlu1 %v380_v33 }
 0x111   : > { %397 = vadd.xlane.f32.xlu0 %v377_v37 }
 0x19a   : > { %v404_v40 = vpop.xlane.xlu0 %403 }
 0x19b   : > { %v407_v41 = vmul.f32 0.03125, %v404_v40  ;;  %v400_v42 = vpop.xlane.xlu1 %399 }
 0x19c   : > { %v406_v43 = vmul.f32 0.03125, %v400_v42 }
 0x19d   : > { %v410_v46 = vsub.f32 %v385_v28, %v407_v41 }
 0x19e   : > { %v409_v47 = vsub.f32 %v380_v33, %v406_v43  ;;  %v398_v48 = vpop.xlane.xlu0 %397 }
 0x19f   : > { %v405_v49 = vmul.f32 0.03125, %v398_v48  ;;  %v413_v53 = vmul.f32 %v533_v45, %v410_v46 }
 0x1a0   : > { %v412_v50 = vmul.f32 %v533_v45, %v409_v47 }
 0x1a1   : > { %v408_v51 = vsub.f32 %v377_v37, %v405_v49  ;;  %v416_v56 = vmul.f32 %v413_v53, %v413_v53 }
 0x1a2   : > { %v415_v52 = vmul.f32 %v412_v50, %v412_v50 }
 0x1a3   : > { %v411_v54 = vmul.f32 %v533_v45, %v408_v51  ;;  %v421_v57 = vsel %vm401_vm1, %v416_v56, 0.0 }
 0x1a4   : > { %419 = vadd.xlane.f32.xlu0 %v415_v52 }
 0x1a5   : > { %v414_v55 = vmul.f32 %v411_v54, %v411_v54 }
 0x1a7   : > { %417 = vadd.xlane.f32.xlu1 %v414_v55 }
 0x1ab   : > { %422 = vadd.xlane.f32.xlu1 %v421_v57 }
 0x231   : > { %v420_v58 = vpop.xlane.xlu0 %419 }
 0x232   : > { %v425_v59 = vmul.f32 0.03125, %v420_v58 }
 0x234   : > { %v428_v60 = vadd.f32 1e-05, %v425_v59  ;;  %v418_v61 = vpop.xlane.xlu1 %417 }
 0x235   : > { %v424_v62 = vmul.f32 0.03125, %v418_v61 }
 0x236   : > { %586 = vrsqrt.f32 %v428_v60 }
 0x237   : > { %v427_v63 = vadd.f32 1e-05, %v424_v62 }
 0x238   : > { %v423_v0 = vpop.xlane.xlu1 %422 }
 0x239   : > { %588 = vrsqrt.f32 %v427_v63  ;;  %v426_v1 = vmul.f32 0.03125, %v423_v0 }
 0x23b   : > { %v429_v2 = vadd.f32 1e-05, %v426_v1 }
 0x23d   : > { %590 = vrsqrt.f32 %v429_v2 }
 0x240   : > { %v587_v3 = vpop.eup %586 }
 0x241   : > { %v434_v5 = vmul.f32 %v587_v3, %v409_v47 }
 0x243   : > { %v589_v7 = vpop.eup %588  ;;  %v443_v8 = vmul.f32 %v534_v4, %v434_v5 }
 0x244   : > { %v433_v9 = vmul.f32 %v589_v7, %v408_v51 }
 0x245   : > { %v452_v10 = vadd.f32 %v535_v6, %v443_v8 }
 0x246   : > { %v442_v11 = vmul.f32 %v534_v4, %v433_v9 }
 0x247   : > { %v591_v12 = vpop.eup %590  ;;  %455 = vst [vmem:[%s224_s13 + $0x8] sm:$0xff] %v452_v10 }
 0x248   : > { %v451_v13 = vadd.f32 %v535_v6, %v442_v11  ;;  %v435_v14 = vmul.f32 %v591_v12, %v410_v46 }
 0x24a   : > { %454 = vst [vmem:[%s224_s13] sm:$0xff] %v451_v13  ;;  %v444_v15 = vmul.f32 %v534_v4, %v435_v14 }
 0x24c   : > { %v453_v16 = vadd.f32 %v535_v6, %v444_v15 }
 0x24e   : > { %456 = vst [vmem:[%s224_s13 + $0x10] sm:$0x1] %v453_v16 }
 0x24f PF: > { %s15_s18 = sadd.s32 1, %s598_s18  }
 0x250   : > { %p12_p4 = scmp.ge.s32.totalorder %s15_s18, 4  }
 0x252   :  { %14 = sbr.rel (!%p12_p4) target bundleno = 1 (0x1), region = 70 }

// kernel: vision_tower_forward.3
= control target key start
LH: loop header
LB: loop body
LE: loop exit
PB: predicated region body
PF: predicated region fallthrough
CT: control target
= control target key end

     0   :  { %s3585_s0 = inlined_call_operand.vmem [shape: f32[2,17,128], index: 0, kind: input, shape index: {}]   ;;  %s3586_s1 = inlined_call_operand.vmem [shape: f32[1,128], index: 1, kind: input, shape index: {}]   ;;  %s3587_s2 = inlined_call_operand.vmem [shape: f32[1,128], index: 2, kind: input, shape index: {}]   ;;  %s3588_s3 = inlined_call_operand.vmem [shape: bf16[128,384], index: 3, kind: input, shape index: {}]   ;;  %s3589_s4 = inlined_call_operand.vmem [shape: f32[1,384], index: 4, kind: input, shape index: {}]   ;;  %s3590_s5 = inlined_call_operand.vmem [shape: bf16[32,128], index: 5, kind: input, shape index: {}]   ;;  %s3591_s6 = inlined_call_operand.vmem [shape: f32[1,128], index: 6, kind: input, shape index: {}]   ;;  %s3592_s7 = inlined_call_operand.vmem [shape: f32[1,128], index: 7, kind: input, shape index: {}]   ;;  %s3593_s8 = inlined_call_operand.vmem [shape: f32[1,128], index: 8, kind: input, shape index: {}]   ;;  %s3594_s9 = inlined_call_operand.vmem [shape: bf16[128,128], index: 9, kind: input, shape index: {}]   ;;  %s3595_s10 = inlined_call_operand.vmem [shape: f32[1,128], index: 10, kind: input, shape index: {}]   ;;  %s3596_s11 = inlined_call_operand.vmem [shape: bf16[128,128], index: 11, kind: input, shape index: {}]   ;;  %s3597_s12 = inlined_call_operand.vmem [shape: f32[1,128], index: 12, kind: input, shape index: {}]   ;;  %s3598_s13 = inlined_call_operand.vmem [shape: f32[2,17,128], index: 13, kind: output, shape index: {0}]   ;;  %s3599_s14 = inlined_call_operand.hbm [shape: f32[2,4,17], index: 14, kind: output, shape index: {1}]  }
   0x1   :  { %3605 = sst [smem:[#allocation9_spill]] %s3585_s0 }
   0x2   :  { %3606 = sst [smem:[#allocation10_spill]] %s3586_s1 }
   0x3   :  { %3607 = sst [smem:[#allocation11_spill]] %s3587_s2 }
   0x4   :  { %20 = vsyncpa [#allocation3], 0 }
   0x5   :  { %22 = vsyncpa [#allocation3 + $0x1], 0  ;;  %s3051_s29 = smov 0   ;;  %s3053_s30 = smov 0  }
   0x6   :  { %s3055_s15 = smov 0   ;;  %s3057_s16 = smov 0  }
   0x7 LB: > { %3608 = sst [smem:[#allocation5_spill]] %s2962_s15  ;;  %s3072_s17 = sadd.s32 4294967295, %s2966_s16   ;;  %s2966_s16 = sphi %s3057_s16, %s3621_s16   ;;  %s2962_s15 = sphi %s3055_s15, %s3623_s15   ;;  %s2958_s30 = sphi %s3053_s30, %s3625_s30   ;;  %s2954_s29 = sphi %s3051_s29, %s3624_s29  }
   0x8   : > { %s2339_s18 = sadd.s32 4294967294, %s2966_s16   ;;  %s3076_s19 = sadd.s32 1, %s2966_s16  }
   0x9   : > { %3609 = sst [smem:[#allocation6_spill]] %s3076_s19  ;;  %s339_s20 = sadd.s32 1, %s2962_s15 }
   0xa   : > { %s336_s21 = ssub.s32 %s2966_s16, %s3076_s19  ;;  %p349_p0 = scmp.ne.s32.totalorder %s2962_s15, %s2958_s30 }
   0xb   : > { %p337_p1 = scmp.eq.s32.totalorder %s336_s21, 0  ;;  %p350_p2 = scmp.eq.s32.totalorder %s3072_s17, 1 }
   0xc   : > { %p355_p3 = scmp.ne.s32.totalorder %s2958_s30, %s2954_s29  ;;  %p356_p4 = scmp.eq.s32.totalorder %s2339_s18, 1 }
   0xd   : > { %s3087_s22 = scalar_select %p337_p1, %s2962_s15, %s339_s20  }
   0xe   : > { %p3089_p5 = por %p350_p2, %p349_p0  ;;  %p3093_p6 = por %p356_p4, %p355_p3 }
   0xf   : > { %3610 = sst [smem:[#allocation7_spill]] %s3087_s22  ;;  %p2342_p7 = scmp.ge.s32.totalorder %s2966_s16, 1 }
  0x10   : > { %s3612_s24 = scalar_select %p3093_p6, 1, 0 }
  0x11   : > { %p418_p8 = scmp.lt.s32.totalorder %s2966_s16, 3 }
  0x12   : > { %3613 = sst [smem:[#allocation8_spill]] %s3612_s24 }
  0x13   : > { %p419_p9 = pnand %p2342_p7, %p418_p8 }
  0x14   : > { %p469_p10 = scmp.lt.s32.totalorder (!%p419_p9), %s3072_s17, 1  ;;  %vm494_vm0 = vcmask (!%p419_p9), 1040384   ;;  %s3614_s0 = sld [smem:[#allocation9_spill]] (!%p419_p9)  ;;  %v2781_v4 = vld [vmem:[%s3588_s3 + $0x4] ss:$12 sps:$4 sm:$0xff] (!%p419_p9)   ;;  %v480_v8 = vlaneseq (!%p419_p9)  ;;  %v2968_v14 = vmov (!%p419_p9), 0.0  }
  0x15   : > { %422 = sbr.rel (%p419_p9) target bundleno = 3458 (0xd82), region = 72  ;;  %v2783_v5 = vld [vmem:[%s3588_s3] ss:$12 sps:$4 sm:$0xff] (!%p419_p9)   ;;  %v2784_v6 = vld [vmem:[%s3588_s3 + $0x8] ss:$12 sps:$4 sm:$0xff] (!%p419_p9)   ;;  %726 = vmatprep.subr.bf16.mxu0 (!%p419_p9), %v2781_v4  ;;  %v2969_v44 = vmov (!%p419_p9), 0  }
  0x16   : > { %v2785_v7 = vld [vmem:[%s3588_s3 + $0x1c] ss:$12 sps:$4 sm:$0xff] (!%p419_p9)   ;;  %2523 = vmatprep.subr.bf16.mxu1 (!%p419_p9), %v2784_v6  ;;  %727 = vmatpush1.bf16.msra.mxu0 (!%p419_p9), %v2783_v5  ;;  %v481_v9 = vand.u32 (!%p419_p9), 127, %v480_v8  ;;  %v2787_v28 = vld [vmem:[%s3588_s3 + $0x18] ss:$12 sps:$4 sm:$0xff] (!%p419_p9)   ;;  %s3615_s1 = sld [smem:[#allocation10_spill]] (!%p419_p9) }
  0x17   : > { %2524 = vmatpush3.bf16.msra.mxu1 (!%p419_p9), %v2784_v6  ;;  %728 = vmatprep.subr.bf16.mxu0 (!%p419_p9), %v2785_v7  ;;  %v2788_v29 = vld [vmem:[%s3588_s3 + $0x20] ss:$12 sps:$4 sm:$0xff] (!%p419_p9)   ;;  %v2791_v31 = vld [vmem:[%s3588_s3 + $0x30] ss:$12 sps:$4 sm:$0xff] (!%p419_p9)   ;;  %v2792_v32 = vld [vmem:[%s3588_s3 + $0x38] ss:$12 sps:$4 sm:$0xff] (!%p419_p9)  }
  0x18   : > { %vm482_vm1 = vcmp.lt.s32.totalorder (!%p419_p9), %v481_v9, 32  ;;  %2525 = vmatprep.subr.bf16.mxu1 (!%p419_p9), %v2788_v29  ;;  %v2789_v30 = vld [vmem:[%s3588_s3 + $0x34] ss:$12 sps:$4 sm:$0xff] (!%p419_p9)   ;;  %v2793_v33 = vld [vmem:[%s3588_s3 + $0x4c] ss:$12 sps:$4 sm:$0xff] (!%p419_p9)   ;;  %758 = vmatprep.mubr.bf16.mxu0 (!%p419_p9), %v2969_v44  ;;  %s3616_s2 = sld [smem:[#allocation11_spill]] (!%p419_p9) }
  0x19   : > { %v3129_v15 = vsel (!%p419_p9), %vm482_vm1, 1.0, %v2968_v14  ;;  %v2795_v34 = vld [vmem:[%s3588_s3 + $0x48] ss:$12 sps:$4 sm:$0xff] (!%p419_p9)   ;;  %v2796_v35 = vld [vmem:[%s3588_s3 + $0x50] ss:$12 sps:$4 sm:$0xff] (!%p419_p9)   ;;  %vm2971_vm2 = vmmov (!%p419_p9), 0  }
  0x1a   : > { %729 = vmatpush1.bf16.msra.mxu0 (!%p419_p9), %v2787_v28  ;;  %v2797_v36 = vld [vmem:[%s3588_s3 + $0x64] ss:$12 sps:$4 sm:$0xff] (!%p419_p9)   ;;  %v2799_v37 = vld [vmem:[%s3588_s3 + $0x60] ss:$12 sps:$4 sm:$0xff] (!%p419_p9)   ;;  %v2800_v38 = vld [vmem:[%s3588_s3 + $0x68] ss:$12 sps:$4 sm:$0xff] (!%p419_p9)  }
  0x1b   : > { %2526 = vmatpush3.bf16.msra.mxu1 (!%p419_p9), %v2788_v29  ;;  %730 = vmatprep.subr.bf16.mxu0 (!%p419_p9), %v2789_v30  ;;  %v2801_v39 = vld [vmem:[%s3588_s3 + $0x7c] ss:$12 sps:$4 sm:$0xff] (!%p419_p9)   ;;  %v2804_v40 = vld [vmem:[%s3588_s3 + $0x80] ss:$12 sps:$4 sm:$0xff] (!%p419_p9)   ;;  %v2803_v41 = vld [vmem:[%s3588_s3 + $0x78] ss:$12 sps:$4 sm:$0xff] (!%p419_p9)  }
  0x1c   : > { %s3101_s25 = scalar_select %p469_p10, %s3072_s17, 1  ;;  %2527 = vmatprep.subr.bf16.mxu1 %v2792_v32  ;;  %v2805_v42 = vld [vmem:[%s3588_s3 + $0x94] ss:$12 sps:$4 sm:$0xff]   ;;  %v2808_v43 = vld [vmem:[%s3588_s3 + $0x98] ss:$12 sps:$4 sm:$0xff]   ;;  %vm829_vm3 = vcmask 64512  }
  0x1d   : > { %v2807_v45 = vld [vmem:[%s3588_s3 + $0x90] ss:$12 sps:$4 sm:$0xff]   ;;  %v2809_v46 = vld [vmem:[%s3588_s3 + $0xac] ss:$12 sps:$4 sm:$0xff]   ;;  %v2811_v48 = vld [vmem:[%s3588_s3 + $0xa8] ss:$12 sps:$4 sm:$0xff]  }
  0x1e   : > { %s3601_s26 = smul.u32 24, %s3101_s25  ;;  %731 = vmatpush1.bf16.msra.mxu0 %v2791_v31  ;;  %v2812_v47 = vld [vmem:[%s3588_s3 + $0xb0] ss:$12 sps:$4 sm:$0xff]   ;;  %v2347_v60 = vld [vmem:[%s3615_s1] ss:$0 sm:$0xff]  ;;  %vm3226_vm4 = vmpackc.low %vm829_vm3, %vm829_vm3  ;;  %s2972_s19 = smov 120  }
  0x1f   : > { %2528 = vmatpush3.bf16.msra.mxu1 %v2792_v32  ;;  %732 = vmatprep.subr.bf16.mxu0 %v2793_v33  ;;  %vm928_vm5 = vcmask 138240   ;;  %vm935_vm6 = vcmask 131072   ;;  %s2973_s24 = smov 112   ;;  %s2974_s27 = smov 104   ;;  %vm1239_vm7 = vcmask 1043456   ;;  %vm2227_vm8 = vcmask 1041408  }
  0x20   : > { %s3109_s18 = scalar_lea.vmem %s3614_s0, %s3601_s26  ;;  %2529 = vmatprep.subr.bf16.mxu1 %v2796_v35  ;;  %s466_s21 = sand.u32 1, %s2958_s30   ;;  %vm2229_vm9 = vcmask 1042432   ;;  %vm2231_vm10 = vcmask 134144  }
  0x21   : > { %v485_v0 = vld [vmem:[%s3109_s18] sm:$0xff]  ;;  %v487_v1 = vld [vmem:[%s3109_s18 + $0x10] sm:$0x1]  ;;  %v486_v2 = vld [vmem:[%s3109_s18 + $0x8] sm:$0xff]  ;;  %s2438_s0 = sshll.u32 %s3072_s17, 6  ;;  %s2239_s20 = scalar_lea.sflag [#allocation3], %s466_s21 }
  0x22   : > { %490 = vadd.xlane.f32.xlu0 %v485_v0  ;;  %v495_v3 = vsel %vm494_vm0, %v487_v1, 0.0  ;;  %733 = vmatpush1.bf16.msra.mxu0 %v2795_v34  ;;  %s2975_s28 = smov [#allocation2]  }
  0x23   : > { %496 = vadd.xlane.f32.xlu1 %v495_v3  ;;  %2530 = vmatpush3.bf16.msra.mxu1 %v2796_v35  ;;  %v3232_v35 = vsel %vm494_vm0, 65535, %v2969_v44  ;;  %s2908_s1 = sshll.u32 %s2975_s28, 4  ;;  %s2909_s1 = int_to_ptr.vmem [resolvable:$false] %s2908_s1 }
  0x24   : > { %734 = vmatprep.subr.bf16.mxu0 %v2797_v36  ;;  %2531 = vmatprep.subr.bf16.mxu1 %v2800_v38 }
  0x26   : > { %492 = vadd.xlane.f32.xlu0 %v486_v2  ;;  %735 = vmatpush1.bf16.msra.mxu0 %v2799_v37 }
  0x27   : > { %2532 = vmatpush3.bf16.msra.mxu1 %v2800_v38  ;;  %736 = vmatprep.subr.bf16.mxu0 %v2801_v39 }
  0x28   : > { %2533 = vmatprep.subr.bf16.mxu1 %v2804_v40 }
  0x2a   : > { %737 = vmatpush1.bf16.msra.mxu0 %v2803_v41 }
  0x2b   : > { %2534 = vmatpush3.bf16.msra.mxu1 %v2804_v40  ;;  %738 = vmatprep.subr.bf16.mxu0 %v2805_v42 }
  0x2c   : > { %2535 = vmatprep.subr.bf16.mxu1 %v2808_v43 }
  0x2e   : > { %739 = vmatpush1.bf16.msra.mxu0 %v2807_v45 }
  0x2f   : > { %2536 = vmatpush3.bf16.msra.mxu1 %v2808_v43  ;;  %740 = vmatprep.subr.bf16.mxu0 %v2809_v46 }
  0x30   : > { %2537 = vmatprep.subr.bf16.mxu1 %v2812_v47 }
  0x32   : > { %741 = vmatpush1.bf16.msra.mxu0 %v2811_v48 }
  0x33   : > { %2538 = vmatpush3.bf16.msra.mxu1 %v2812_v47 }
  0xaf   : > { %v491_v10 = vpop.xlane.xlu0 %490 }
  0xb0   : > { %v498_v11 = vmul.f32 0.03125, %v491_v10  ;;  %v497_v12 = vpop.xlane.xlu1 %496 }
  0xb1   : > { %v500_v13 = vmul.f32 0.03125, %v497_v12  ;;  %v584_v12 = vshrl.u32 %v480_v8, 7 }
  0xb2   : > { %v3131_v16 = vsub.f32 %v485_v0, %v498_v11  ;;  %v2970_v11 = vmov 0.0|0.0  }
  0xb3   : > { %v3133_v17 = vsub.f32 %v487_v1, %v500_v13  ;;  %v493_v18 = vpop.xlane.xlu0 %492  ;;  %2699 = vmatprep.subr.bf16.mxu1 %v2970_v11  ;;  %v593_v13 = vsub.s32 2, %v584_v12 }
  0xb4   : > { %v499_v19 = vmul.f32 0.03125, %v493_v18  ;;  %v504_v20 = vmul.f32 %v3129_v15, %v3131_v16 }
  0xb5   : > { %v506_v21 = vmul.f32 %v3129_v15, %v3133_v17 }
  0xb6   : > { %v3139_v22 = vsub.f32 %v486_v2, %v499_v19  ;;  %v507_v23 = vmul.f32 %v504_v20, %v504_v20  ;;  %v2348_v2 = vld [vmem:[%s3616_s2] ss:$0 sm:$0xff]  ;;  %s2910_s2 = scalar_lea.vmem %s2909_s1, 128 }
  0xb7   : > { %v509_v24 = vmul.f32 %v506_v21, %v506_v21 }
  0xb8   : > { %510 = vadd.xlane.f32.xlu1 %v507_v23  ;;  %v505_v25 = vmul.f32 %v3129_v15, %v3139_v22 }
  0xb9   : > { %v514_v26 = vsel %vm494_vm0, %v509_v24, 0.0 }
  0xba   : > { %v508_v27 = vmul.f32 %v505_v25, %v505_v25 }
  0xbc   : > { %515 = vadd.xlane.f32.xlu1 %v514_v26  ;;  %512 = vadd.xlane.f32.xlu0 %v508_v27  ;;  %v585_v26 = vsub.s32 0, %v584_v12 }
 0x145   : > { %v511_v49 = vpop.xlane.xlu1 %510 }
 0x146   : > { %v517_v50 = vmul.f32 0.03125, %v511_v49 }
 0x148   : > { %v520_v51 = vadd.f32 1e-05, %v517_v50 }
 0x149   : > { %v516_v52 = vpop.xlane.xlu1 %515  ;;  %v513_v53 = vpop.xlane.xlu0 %512 }
 0x14a   : > { %2829 = vrsqrt.f32 %v520_v51  ;;  %v519_v54 = vmul.f32 0.03125, %v516_v52  ;;  %v518_v55 = vmul.f32 0.03125, %v513_v53 }
 0x14c   : > { %v522_v56 = vadd.f32 1e-05, %v519_v54  ;;  %v521_v57 = vadd.f32 1e-05, %v518_v55 }
 0x14e   : > { %2831 = vrsqrt.f32 %v522_v56 }
 0x14f   : > { %2833 = vrsqrt.f32 %v521_v57 }
 0x154   : > { %v2830_v58 = vpop.eup %2829 }
 0x155   : > { %v526_v59 = vmul.f32 %v2830_v58, %v3131_v16  ;;  %v581_v16 = vld [vmem:[%s3589_s4] sm:$0x7] }
 0x156   : > { %v594_v18 = vrot.slane %v581_v16, %v593_v13  ;;  %v586_v38 = vrot.slane %v581_v16, %v585_v26 }
 0x157   : > { %v535_v1 = vmul.f32 %v2347_v60, %v526_v59 }
 0x158   : > { %v2832_v61 = vpop.eup %2831 }
 0x159   : > { %v2834_v62 = vpop.eup %2833  ;;  %v528_v63 = vmul.f32 %v2832_v61, %v3133_v17  ;;  %v544_v6 = vadd.f32 %v2348_v2, %v535_v1  ;;  %v589_v17 = vsub.s32 1, %v584_v12 }
 0x15a   : > { %v527_v0 = vmul.f32 %v2834_v62, %v3139_v22 }
 0x15b   : > { %v537_v3 = vmul.f32 %v2347_v60, %v528_v63  ;;  %v590_v20 = vrot.slane %v581_v16, %v589_v17 }
 0x15c   : > { %v536_v4 = vmul.f32 %v2347_v60, %v527_v0 }
 0x15d   : > { %v546_v5 = vadd.f32 %v2348_v2, %v537_v3 }
 0x15e   : > { %v545_v7 = vadd.f32 %v2348_v2, %v536_v4 }
 0x15f   : > { %v548_v9 = vpack.c.bf16 %v546_v5, %v546_v5 }
 0x160   : > { %v547_v10 = vpack.c.bf16 %v545_v7, %v544_v6 }
 0x162   : > { %759 = vmatmul.mubr.bf16.vlgmr.msra.gmra.mrb[0].mxu0 %v547_v10  ;;  %2539 = vmatprep.mubr.bf16.mxu1 %v547_v10 }
 0x163   : > { %2540 = vmatmul.mubr.bf16.vlgmr.msra.gmra.mrb[0].mxu1 %v548_v9  ;;  %768 = vmatprep.mubr.bf16.mxu0 %v2969_v44 }
 0x164   : > { %2549 = vmatprep.mubr.msk.f32.mxu1 %vm2971_vm2, %v2968_v14 }
 0x16a   : > { %769 = vmatmul.mubr.bf16.gmra.mrb[4].mxu0 %v548_v9 }
 0x235   : > { %v760_v19 = vpop.f32.mrb[0].mxu0 }
 0x236   : > { %v762_v21 = vpop.f32.mrb[1].mxu0  ;;  %v2541_v22 = vpop.f32.mrb[0].mxu1  ;;  %v3255_v47 = vadd.f32 %v760_v19, %v586_v38 }
 0x237   : > { %v820_v23 = vadd.f32 %v2541_v22, %v594_v18  ;;  %v764_v24 = vpop.f32.mrb[2].mxu0  ;;  %v811_v25 = vpop.f32.mrb[1].mxu1  ;;  %v763_v29 = vadd.f32 %v762_v21, %v590_v20 }
 0x238   : > { %v766_v27 = vpop.f32.mrb[3].mxu0  ;;  %v2542_v28 = vpop.f32.mrb[2].mxu1  ;;  %v812_v32 = vadd.f32 %v811_v25, %v594_v18  ;;  %v3262_v48 = vadd.f32 %v764_v24, %v586_v38 }
 0x239   : > { %v767_v8 = vadd.f32 %v766_v27, %v590_v20  ;;  %v814_v30 = vpop.f32.mrb[3].mxu1  ;;  %v3222_v31 = vpack.c.bf16 %v820_v23, %v820_v23 }
 0x23a   : > { %v815_v33 = vadd.f32 %v814_v30, %v594_v18 }
 0x23b   : > { %v2700_v36 = vpack.c.bf16 %v767_v8, %v763_v29  ;;  %v3234_v37 = vpack.i.bf16 %v767_v8, %v763_v29  ;;  %v976_v43 = vand.u32 %v3232_v35, %v3222_v31 }
 0x23c   : > { %v3236_v39 = vpack.c.bf16 %v815_v33, %v812_v32 }
 0x23d   : > { %v770_v40 = vpop.f32.mrb[4].mxu0  ;;  %2767 = vrot.lane.b32.xlu0 %v3234_v37, %s2972_s19  ;;  %2702 = vmatpush3.bf16.xpose.msk.msra.mxu1 %vm3226_vm4, %v2700_v36 }
 0x23e   : > { %v3242_v41 = vadd.f32 %v770_v40, %v586_v38  ;;  %v772_v42 = vpop.f32.mrb[5].mxu0  ;;  %2558 = vmatprep.subr.bf16.mxu0 %v3236_v39  ;;  %2547 = vmatprep.subr.mxu1 %v2968_v14 }
 0x23f   : > { %v3248_v44 = vadd.f32 %v772_v42, %v590_v20  ;;  %v774_v45 = vpop.f32.mrb[6].mxu0  ;;  %2559 = vmatpush3.bf16.msra.mxu0 %v3236_v39 }
 0x240   : > { %v775_v46 = vpop.f32.mrb[7].mxu0  ;;  %2560 = vmatprep.subr.bf16.mxu0 %v976_v43 }
 0x241   : > { %1038 = vrot.lane.b32.xlu1 %v3248_v44, %s2972_s19  ;;  %1032 = vrot.lane.b32.xlu0 %v3242_v41, %s2972_s19 }
 0x243   : > { %2561 = vmatpush3.bf16.msra.mxu0 %v976_v43 }
 0x245   : > { %2548 = vmatpush3.xpose.msk.msra.mxu1 %vm829_vm3, %v3248_v44  ;;  %1028 = vrot.lane.b32.xlu1 %v3255_v47, %s2972_s19 }
 0x246   : > { %2703 = vmatprep.subr.bf16.mxu1 %v2970_v11 }
 0x248   : > { %2550 = vmatmul.mubr.msk.f32.vlgmr.msra.gmra.mrb[4].mxu1 %vm829_vm3, %v3255_v47 }
 0x249   : > { %1030 = vrot.lane.b32.xlu1 %v3262_v48, %s2972_s19  ;;  %2552 = vmatprep.mubr.msk.f32.mxu1 %vm2971_vm2, %v2968_v14 }
 0x24c   : > { %2553 = vmatmul.mubr.msk.f32.gmra.mrb[6].mxu1 %vm829_vm3, %v3262_v48 }
 0x24d   : > { %2555 = vmatprep.mubr.msk.f32.mxu1 %vm2971_vm2, %v2968_v14 }
 0x250   : > { %2556 = vmatmul.mubr.msk.f32.gmra.mrb[8].mxu1 %vm829_vm3, %v3242_v41 }
 0x251   : > { %2572 = vmatprep.mubr.msk.f32.mxu1 %vm2971_vm2, %v2968_v14 }
 0x2af   : > { %v2768_v49 = vpop.permute.xlu0 %2767 }
 0x2b0   : > { %v2770_v50 = vunpack.i.h.bf16 %v2768_v49  ;;  %v2769_v51 = vunpack.i.l.bf16 %v2768_v49 }
 0x2b2   : > { %v2704_v52 = vpack.c.bf16 %v2770_v50, %v2769_v51 }
 0x2b3   : > { %v1039_v53 = vpop.permute.xlu1 %1038  ;;  %v1033_v56 = vpop.permute.xlu0 %1032 }
 0x2b4   : > { %2706 = vmatpush3.bf16.xpose.msk.msra.mxu1 %vm3226_vm4, %v2704_v52 }
 0x2b5   : > { %2570 = vmatprep.subr.mxu1 %v2968_v14 }
 0x2b7   : > { %v1029_v54 = vpop.permute.xlu1 %1028 }
 0x2bb   : > { %v1031_v55 = vpop.permute.xlu1 %1030 }
 0x2bc   : > { %2571 = vmatpush3.xpose.msk.msra.mxu1 %vm829_vm3, %v1039_v53 }
 0x2bf   : > { %2573 = vmatmul.mubr.msk.f32.vlgmr.msra.gmra.mrb[10].mxu1 %vm829_vm3, %v1029_v54 }
 0x2c0   : > { %2575 = vmatprep.mubr.msk.f32.mxu1 %vm2971_vm2, %v2968_v14 }
 0x2c3   : > { %2576 = vmatmul.mubr.msk.f32.gmra.mrb[12].mxu1 %vm829_vm3, %v1031_v55 }
 0x2c4   : > { %2578 = vmatprep.mubr.msk.f32.mxu1 %vm2971_vm2, %v2968_v14 }
 0x2c7   : > { %2579 = vmatmul.mubr.msk.f32.gmra.mrb[14].mxu1 %vm829_vm3, %v1033_v56 }
 0x31b   : > { %v914_v57 = vpop.f32.mrb[4].mxu1 }
 0x31c   : > { %v2551_v58 = vpop.f32.mrb[5].mxu1  ;;  %v929_v59 = vsel %vm928_vm5, %v914_v57, -inf }
 0x31d   : > { %930 = vmax.xlane.f32.xlu1 %v929_v59 }
 0x31f   : > { %v919_v60 = vpop.f32.mrb[6].mxu1 }
 0x320   : > { %v2554_v61 = vpop.f32.mrb[7].mxu1  ;;  %v932_v62 = vsel %vm928_vm5, %v919_v60, -inf }
 0x321   : > { %933 = vmax.xlane.f32.xlu0 %v932_v62 }
 0x323   : > { %v924_v63 = vpop.f32.mrb[8].mxu1 }
 0x324   : > { %v2557_v0 = vpop.f32.mrb[9].mxu1  ;;  %v936_v1 = vsel %vm935_vm6, %v924_v63, -inf }
 0x325   : > { %937 = vmax.xlane.f32.xlu0 %v936_v1 }
 0x392   : > { %v1118_v2 = vpop.f32.mrb[10].mxu1 }
 0x393   : > { %v2574_v3 = vpop.f32.mrb[11].mxu1  ;;  %v1132_v4 = vsel %vm928_vm5, %v1118_v2, -inf }
 0x394   : > { %1133 = vmax.xlane.f32.xlu0 %v1132_v4  ;;  %v826_v4 = vld [vmem:[%s3590_s5 + $0x4] sm:$0xf] }
 0x396   : > { %v1123_v5 = vpop.f32.mrb[12].mxu1 }
 0x397   : > { %v2577_v6 = vpop.f32.mrb[13].mxu1  ;;  %v1135_v7 = vsel %vm928_vm5, %v1123_v5, -inf }
 0x398   : > { %1136 = vmax.xlane.f32.xlu1 %v1135_v7 }
 0x39a   : > { %v1128_v9 = vpop.f32.mrb[14].mxu1 }
 0x39b   : > { %v2580_v10 = vpop.f32.mrb[15].mxu1  ;;  %v1138_v12 = vsel %vm935_vm6, %v1128_v9, -inf }
 0x39c   : > { %1139 = vmax.xlane.f32.xlu0 %v1138_v12 }
 0x3aa   : > { %v931_v13 = vpop.xlane.xlu1 %930 }
 0x3ab   : > { %v939_v16 = vsub.f32 %v914_v57, %v931_v13 }
 0x3ad   : > { %v942_v17 = vmul.f32 1.442695, %v939_v16  ;;  %v1241_v16 = vsel %vm1239_vm7, %v826_v4, 0 }
 0x3ae   : > { %v934_v18 = vpop.xlane.xlu0 %933 }
 0x3af   : > { %2835 = vpow2.f32 %v942_v17  ;;  %v940_v19 = vsub.f32 %v919_v60, %v934_v18 }
 0x3b1   : > { %v944_v20 = vmul.f32 1.442695, %v940_v19 }
 0x3b2   : > { %v938_v21 = vpop.xlane.xlu0 %937 }
 0x3b3   : > { %2837 = vpow2.f32 %v944_v20  ;;  %v941_v22 = vsub.f32 %v924_v63, %v938_v21 }
 0x3b5   : > { %v946_v23 = vmul.f32 1.442695, %v941_v22 }
 0x3b7   : > { %2839 = vpow2.f32 %v946_v23 }
 0x3b9   : > { %v2836_v24 = vpop.eup %2835 }
 0x3ba   : > { %v948_v25 = vsel %vm928_vm5, %v2836_v24, 0.0 }
 0x3bb   : > { %949 = vadd.xlane.f32.xlu1 %v948_v25 }
 0x3bd   : > { %v2838_v26 = vpop.eup %2837 }
 0x3be   : > { %v951_v27 = vsel %vm928_vm5, %v2838_v26, 0.0 }
 0x3bf   : > { %952 = vadd.xlane.f32.xlu0 %v951_v27 }
 0x3c1   : > { %v2840_v28 = vpop.eup %2839 }
 0x3c2   : > { %v954_v29 = vsel %vm935_vm6, %v2840_v28, 0.0 }
 0x3c3   : > { %955 = vadd.xlane.f32.xlu1 %v954_v29 }
 0x421   : > { %v1134_v8 = vpop.xlane.xlu0 %1133 }
 0x422   : > { %v1141_v30 = vsub.f32 %v1118_v2, %v1134_v8 }
 0x424   : > { %v1144_v32 = vmul.f32 1.442695, %v1141_v30 }
 0x425   : > { %v1137_v33 = vpop.xlane.xlu1 %1136 }
 0x426   : > { %2841 = vpow2.f32 %v1144_v32  ;;  %v1142_v36 = vsub.f32 %v1123_v5, %v1137_v33 }
 0x428   : > { %v1146_v38 = vmul.f32 1.442695, %v1142_v36 }
 0x429   : > { %v1140_v40 = vpop.xlane.xlu0 %1139 }
 0x42a   : > { %2843 = vpow2.f32 %v1146_v38  ;;  %v1143_v42 = vsub.f32 %v1128_v9, %v1140_v40 }
 0x42c   : > { %v1148_v43 = vmul.f32 1.442695, %v1143_v42 }
 0x42e   : > { %2845 = vpow2.f32 %v1148_v43 }
 0x430   : > { %v2842_v45 = vpop.eup %2841 }
 0x431   : > { %v1150_v46 = vsel %vm928_vm5, %v2842_v45, 0.0 }
 0x432   : > { %1151 = vadd.xlane.f32.xlu0 %v1150_v46 }
 0x434   : > { %v2844_v49 = vpop.eup %2843 }
 0x435   : > { %v1153_v50 = vsel %vm928_vm5, %v2844_v49, 0.0 }
 0x436   : > { %1154 = vadd.xlane.f32.xlu1 %v1153_v50 }
 0x438   : > { %v2846_v51 = vpop.eup %2845 }
 0x439   : > { %v1156_v52 = vsel %vm935_vm6, %v2846_v51, 0.0 }
 0x43a   : > { %1157 = vadd.xlane.f32.xlu0 %v1156_v52 }
 0x447   : > { %1169 = vrot.lane.b32.xlu1 %v3236_v39, %s2972_s19 }
 0x448   : > { %v950_v53 = vpop.xlane.xlu1 %949 }
 0x449   : > { %2847 = vrcp.f32 %v950_v53 }
 0x44b   : > { %2772 = vrot.lane.b32.xlu1 %v3234_v37, %s2973_s24 }
 0x44c   : > { %v953_v54 = vpop.xlane.xlu0 %952 }
 0x44d   : > { %2849 = vrcp.f32 %v953_v54 }
 0x44f   : > { %1358 = vrot.lane.b32.xlu1 %v3248_v44, %s2973_s24 }
 0x450   : > { %v956_v55 = vpop.xlane.xlu1 %955  ;;  %1171 = vrot.lane.b32.xlu0 %v3222_v31, %s2972_s19  ;;  %s3430_s19 = sshll.u32 %s466_s21, 2 }
 0x451   : > { %2851 = vrcp.f32 %v956_v55 }
 0x453   : > { %1348 = vrot.lane.b32.xlu1 %v3255_v47, %s2973_s24  ;;  %v2848_v56 = vpop.eup %2847 }
 0x454   : > { %1350 = vrot.lane.b32.xlu0 %v3262_v48, %s2973_s24  ;;  %v3317_v58 = vmul.f32 %v2848_v56, %v2836_v24 }
 0x457   : > { %v2850_v57 = vpop.eup %2849  ;;  %1352 = vrot.lane.b32.xlu1 %v3242_v41, %s2973_s24 }
 0x458   : > { %2777 = vrot.lane.b32.xlu0 %v3234_v37, %s2974_s27  ;;  %v961_v59 = vmul.f32 %v2850_v57, %v2838_v26  ;;  %v825_v37 = vld [vmem:[%s3590_s5] sm:$0xf] }
 0x459   : > { %2716 = vmatprep.subr.msk.bf16.mxu1 %vm1239_vm7, %v825_v37 }
 0x45a   : > { %v963_v60 = vpack.c.bf16 %v961_v59, %v3317_v58 }
 0x45b   : > { %v2852_v61 = vpop.eup %2851  ;;  %1621 = vrot.lane.b32.xlu1 %v3248_v44, %s2974_s27  ;;  %v1298_v44 = vsel %vm1239_vm7, %v825_v37, 0 }
 0x45c   : > { %v962_v62 = vmul.f32 %v2852_v61, %v2840_v28  ;;  %1611 = vrot.lane.b32.xlu0 %v3255_v47, %s2974_s27  ;;  %2562 = vmatprep.mubr.msk.bf16.mxu0 %vm928_vm5, %v963_v60 }
 0x45d   : > { %2596 = vmatpush3.bf16.msra.mxu1 %v1298_v44 }
 0x45e   : > { %v964_v63 = vpack.c.bf16 %v962_v62, %v962_v62 }
 0x45f   : > { %1613 = vrot.lane.b32.xlu1 %v3262_v48, %s2974_s27 }
 0x460   : > { %1615 = vrot.lane.b32.xlu0 %v3242_v41, %s2974_s27  ;;  %2563 = vmatmul.mubr.msk.bf16.vlgmr.msra.gmra.mrb[8].mxu0 %vm928_vm5, %v964_v63 }
 0x4bf   : > { %v1152_v47 = vpop.xlane.xlu0 %1151 }
 0x4c0   : > { %2853 = vrcp.f32 %v1152_v47 }
 0x4c3   : > { %v1155_v0 = vpop.xlane.xlu1 %1154 }
 0x4c4   : > { %2855 = vrcp.f32 %v1155_v0 }
 0x4c7   : > { %v1170_v48 = vpop.permute.xlu1 %1169  ;;  %v1158_v1 = vpop.xlane.xlu0 %1157 }
 0x4c8   : > { %2857 = vrcp.f32 %v1158_v1  ;;  %2581 = vmatprep.subr.bf16.mxu0 %v1170_v48 }
 0x4c9   : > { %2582 = vmatpush3.bf16.msra.mxu0 %v1170_v48 }
 0x4ca   : > { %v2854_v2 = vpop.eup %2853 }
 0x4cb   : > { %v1172_v41 = vpop.permute.xlu0 %1171  ;;  %v3339_v6 = vmul.f32 %v2854_v2, %v2842_v45  ;;  %v2773_v23 = vpop.permute.xlu1 %2772 }
 0x4cc   : > { %v1181_v3 = vand.u32 %v1172_v41, %v3232_v35  ;;  %v2775_v26 = vunpack.i.h.bf16 %v2773_v23  ;;  %v2774_v27 = vunpack.i.l.bf16 %v2773_v23 }
 0x4ce   : > { %v2856_v5 = vpop.eup %2855  ;;  %2583 = vmatprep.subr.bf16.mxu0 %v1181_v3  ;;  %v2708_v33 = vpack.c.bf16 %v2775_v26, %v2774_v27 }
 0x4cf   : > { %2584 = vmatpush3.bf16.msra.mxu0 %v1181_v3  ;;  %v1163_v7 = vmul.f32 %v2856_v5, %v2844_v49  ;;  %v1351_v30 = vpop.permute.xlu0 %1350  ;;  %v1359_v36 = vpop.permute.xlu1 %1358 }
 0x4d0   : > { %2715 = vmatprep.subr.msk.bf16.mxu0 %vm1239_vm7, %v826_v4 }
 0x4d1   : > { %v1165_v9 = vpack.c.bf16 %v1163_v7, %v3339_v6 }
 0x4d2   : > { %v2858_v10 = vpop.eup %2857 }
 0x4d3   : > { %v1164_v12 = vmul.f32 %v2858_v10, %v2846_v51  ;;  %2585 = vmatprep.mubr.msk.bf16.mxu0 %vm928_vm5, %v1165_v9  ;;  %v2778_v38 = vpop.permute.xlu0 %2777  ;;  %v1349_v43 = vpop.permute.xlu1 %1348 }
 0x4d4   : > { %v2780_v40 = vunpack.i.h.bf16 %v2778_v38  ;;  %v2779_v42 = vunpack.i.l.bf16 %v2778_v38 }
 0x4d5   : > { %v1166_v13 = vpack.c.bf16 %v1164_v12, %v1164_v12 }
 0x4d6   : > { %v2712_v45 = vpack.c.bf16 %v2780_v40, %v2779_v42  ;;  %v2218_v40 = vrot.slane %v3339_v6, 7 }
 0x4d7   : > { %2586 = vmatmul.mubr.msk.bf16.vlgmr.msra.gmra.mrb[12].mxu0 %vm928_vm5, %v1166_v13  ;;  %v1353_v46 = vpop.permute.xlu1 %1352 }
 0x4d8   : > { %2590 = vmatpush3.bf16.msra.mxu0 %v1241_v16 }
 0x4d9   : > { %2707 = vmatprep.subr.bf16.mxu0 %v2970_v11 }
 0x4db   : > { %v1622_v49 = vpop.permute.xlu1 %1621 }
 0x4df   : > { %v1614_v34 = vpop.permute.xlu1 %1613 }
 0x533   : > { %v2564_v17 = vpop.f32.mrb[8].mxu0 }
 0x534   : > { %v1012_v18 = vpop.f32.mrb[9].mxu0  ;;  %v1027_v22 = vpack.c.bf16 %v2564_v17, %v2564_v17 }
 0x535   : > { %v2565_v19 = vpop.f32.mrb[10].mxu0 }
 0x536   : > { %v1015_v20 = vpop.f32.mrb[11].mxu0 }
 0x537   : > { %v1026_v21 = vpack.c.bf16 %v1015_v20, %v1012_v18 }
 0x539   : > { %2597 = vmatprep.mubr.msk.bf16.mxu1 %vm829_vm3, %v1026_v21 }
 0x53a   : > { %2598 = vmatmul.mubr.msk.bf16.vlgmr.msra.gmra.mrb[16].mxu1 %vm829_vm3, %v1027_v22 }
 0x5aa   : > { %v2587_v24 = vpop.f32.mrb[12].mxu0 }
 0x5ab   : > { %v1217_v25 = vpop.f32.mrb[13].mxu0  ;;  %v1232_v32 = vpack.c.bf16 %v2587_v24, %v2587_v24 }
 0x5ac   : > { %v2588_v28 = vpop.f32.mrb[14].mxu0 }
 0x5ad   : > { %v1220_v29 = vpop.f32.mrb[15].mxu0 }
 0x5ae   : > { %v1231_v8 = vpack.c.bf16 %v1220_v29, %v1217_v25 }
 0x5b0   : > { %2591 = vmatprep.mubr.msk.bf16.mxu0 %vm829_vm3, %v1231_v8 }
 0x5b1   : > { %2592 = vmatmul.mubr.msk.bf16.vlgmr.msra.gmra.mrb[16].mxu0 %vm829_vm3, %v1232_v32 }
 0x5b2   : > { %2710 = vmatpush3.bf16.xpose.msk.msra.mxu0 %vm3226_vm4, %v2708_v33  ;;  %2607 = vmatprep.mubr.msk.f32.mxu0 %vm2971_vm2, %v2968_v14 }
 0x5b3   : > { %2605 = vmatprep.subr.mxu0 %v2968_v14 }
 0x5ba   : > { %2606 = vmatpush3.xpose.msk.msra.mxu0 %vm829_vm3, %v1359_v36 }
 0x5bb   : > { %2711 = vmatprep.subr.bf16.mxu0 %v2970_v11  ;;  %v1612_v11 = vpop.permute.xlu0 %1611 }
 0x5bd   : > { %2608 = vmatmul.mubr.msk.f32.vlgmr.msra.gmra.mrb[20].mxu0 %vm829_vm3, %v1349_v43 }
 0x5be   : > { %2714 = vmatpush3.bf16.xpose.msk.msra.mxu0 %vm3226_vm4, %v2712_v45  ;;  %2610 = vmatprep.mubr.msk.f32.mxu0 %vm2971_vm2, %v2968_v14 }
 0x5bf   : > { %2634 = vmatprep.subr.mxu0 %v2968_v14  ;;  %v1616_v50 = vpop.permute.xlu0 %1615 }
 0x5c1   : > { %2611 = vmatmul.mubr.msk.f32.gmra.mrb[22].mxu0 %vm829_vm3, %v1351_v30 }
 0x5c2   : > { %2613 = vmatprep.mubr.msk.f32.mxu0 %vm2971_vm2, %v2968_v14 }
 0x5c5   : > { %2614 = vmatmul.mubr.msk.f32.gmra.mrb[24].mxu0 %vm829_vm3, %v1353_v46 }
 0x5c6   : > { %2635 = vmatpush3.xpose.msk.msra.mxu0 %vm829_vm3, %v1622_v49  ;;  %2636 = vmatprep.mubr.msk.f32.mxu0 %vm2971_vm2, %v2968_v14 }
 0x5c9   : > { %2637 = vmatmul.mubr.msk.f32.vlgmr.msra.gmra.mrb[26].mxu0 %vm829_vm3, %v1612_v11  ;;  %v2226_v11 = vsel %vm494_vm0, %v3317_v58, %v2218_v40 }
 0x5ca   : > { %2639 = vmatprep.mubr.msk.f32.mxu0 %vm2971_vm2, %v2968_v14 }
 0x5cd   : > { %2640 = vmatmul.mubr.msk.f32.gmra.mrb[28].mxu0 %vm829_vm3, %v1614_v34 }
 0x5ce   : > { %2642 = vmatprep.mubr.msk.f32.mxu0 %vm2971_vm2, %v2968_v14 }
 0x5d1   : > { %2643 = vmatmul.mubr.msk.f32.gmra.mrb[30].mxu0 %vm829_vm3, %v1616_v50 }
 0x60d   : > { %v2599_v51 = vpop.f32.mrb[16].mxu1 }
 0x60e   : > { %v1334_v52 = vpop.f32.mrb[17].mxu1 }
 0x60f   : > { %v2600_v53 = vpop.f32.mrb[18].mxu1 }
 0x610   : > { %v1337_v54 = vpop.f32.mrb[19].mxu1 }
 0x684   : > { %v2593_v55 = vpop.f32.mrb[16].mxu0 }
 0x685   : > { %v3378_v56 = vadd.f32 %v2599_v51, %v2593_v55  ;;  %v1277_v57 = vpop.f32.mrb[17].mxu0 }
 0x686   : > { %v3380_v59 = vadd.f32 %v1334_v52, %v1277_v57  ;;  %v2594_v60 = vpop.f32.mrb[18].mxu0 }
 0x687   : > { %v1280_v61 = vpop.f32.mrb[19].mxu0 }
 0x688   : > { %v3382_v62 = vadd.f32 %v1337_v54, %v1280_v61 }
 0x690   : > { %v1438_v63 = vpop.f32.mrb[20].mxu0 }
 0x691   : > { %v2609_v37 = vpop.f32.mrb[21].mxu0  ;;  %v1452_v14 = vsel %vm928_vm5, %v1438_v63, -inf }
 0x692   : > { %1453 = vmax.xlane.f32.xlu1 %v1452_v14 }
 0x694   : > { %v1443_v44 = vpop.f32.mrb[22].mxu0 }
 0x695   : > { %v2612_v47 = vpop.f32.mrb[23].mxu0  ;;  %v1455_v0 = vsel %vm928_vm5, %v1443_v44, -inf }
 0x696   : > { %1456 = vmax.xlane.f32.xlu0 %v1455_v0 }
 0x698   : > { %v1448_v48 = vpop.f32.mrb[24].mxu0 }
 0x699   : > { %v2615_v1 = vpop.f32.mrb[25].mxu0  ;;  %v1458_v41 = vsel %vm935_vm6, %v1448_v48, -inf }
 0x69a   : > { %1459 = vmax.xlane.f32.xlu0 %v1458_v41 }
 0x69c   : > { %v3387_v2 = vpop.f32.mrb[26].mxu0 }
 0x69d   : > { %v2638_v3 = vpop.f32.mrb[27].mxu0  ;;  %v1715_v28 = vsel %vm928_vm5, %v3387_v2, -inf }
 0x6a0   : > { %v3389_v4 = vpop.f32.mrb[28].mxu0 }
 0x6a1   : > { %v2641_v5 = vpop.f32.mrb[29].mxu0  ;;  %v1718_v29 = vsel %vm928_vm5, %v3389_v4, -inf }
 0x6a4   : > { %v3391_v7 = vpop.f32.mrb[30].mxu0 }
 0x6a5   : > { %v2644_v9 = vpop.f32.mrb[31].mxu0  ;;  %v1721_v8 = vsel %vm935_vm6, %v3391_v7, -inf }
 0x71f   : > { %v1454_v10 = vpop.xlane.xlu1 %1453 }
 0x720   : > { %v1461_v12 = vsub.f32 %v1438_v63, %v1454_v10 }
 0x722   : > { %v1464_v13 = vmul.f32 1.442695, %v1461_v12 }
 0x723   : > { %v1457_v16 = vpop.xlane.xlu0 %1456 }
 0x724   : > { %2859 = vpow2.f32 %v1464_v13  ;;  %v1462_v17 = vsub.f32 %v1443_v44, %v1457_v16 }
 0x726   : > { %v1466_v18 = vmul.f32 1.442695, %v1462_v17 }
 0x727   : > { %v1460_v19 = vpop.xlane.xlu0 %1459 }
 0x728   : > { %2861 = vpow2.f32 %v1466_v18  ;;  %v1463_v20 = vsub.f32 %v1448_v48, %v1460_v19 }
 0x72a   : > { %v1468_v21 = vmul.f32 1.442695, %v1463_v20 }
 0x72c   : > { %2863 = vpow2.f32 %v1468_v21 }
 0x72e   : > { %v2860_v22 = vpop.eup %2859 }
 0x72f   : > { %v1470_v23 = vsel %vm928_vm5, %v2860_v22, 0.0 }
 0x730   : > { %1471 = vadd.xlane.f32.xlu0 %v1470_v23 }
 0x732   : > { %v2862_v24 = vpop.eup %2861 }
 0x733   : > { %v1473_v25 = vsel %vm928_vm5, %v2862_v24, 0.0 }
 0x734   : > { %1474 = vadd.xlane.f32.xlu1 %v1473_v25 }
 0x736   : > { %v2864_v26 = vpop.eup %2863 }
 0x737   : > { %v1476_v27 = vsel %vm935_vm6, %v2864_v26, 0.0 }
 0x738   : > { %1477 = vadd.xlane.f32.xlu0 %v1476_v27 }
 0x745   : > { %1487 = vrot.lane.b32.xlu1 %v3236_v39, %s2973_s24 }
 0x74e   : > { %1489 = vrot.lane.b32.xlu0 %v3222_v31, %s2973_s24  ;;  %s468_s24 = scalar_lea.vmem [#allocation2], %s3430_s19 }
 0x74f   : > { %s2255_s15 = sshll.u32 %s468_s24, 4  ;;  %s2256_s15 = int_to_ptr.vmem [resolvable:$true] %s2255_s15 }
 0x750   : > { %p2911_p0 = scmp.lt.s32.totalorder %s2256_s15, %s2909_s1 }
 0x769   : > { %1716 = vmax.xlane.f32.xlu1 %v1715_v28 }
 0x76d   : > { %1719 = vmax.xlane.f32.xlu0 %v1718_v29  ;;  %1722 = vmax.xlane.f32.xlu1 %v1721_v8  ;;  %v828_v29 = vld [vmem:[%s3590_s5 + $0xc] sm:$0xf] }
 0x76e   : > { %2718 = vmatprep.subr.msk.bf16.mxu0 %vm1239_vm7, %v828_v29  ;;  %v1821_v8 = vsel %vm1239_vm7, %v828_v29, 0 }
 0x76f   : > { %2654 = vmatpush3.bf16.msra.mxu0 %v1821_v8 }
 0x7bd   : > { %v1472_v30 = vpop.xlane.xlu0 %1471 }
 0x7be   : > { %2865 = vrcp.f32 %v1472_v30 }
 0x7c1   : > { %v1475_v32 = vpop.xlane.xlu1 %1474 }
 0x7c2   : > { %2867 = vrcp.f32 %v1475_v32 }
 0x7c5   : > { %v1488_v33 = vpop.permute.xlu1 %1487  ;;  %v1478_v36 = vpop.xlane.xlu0 %1477 }
 0x7c6   : > { %2869 = vrcp.f32 %v1478_v36  ;;  %2616 = vmatprep.subr.bf16.mxu1 %v1488_v33 }
 0x7c7   : > { %2617 = vmatpush3.bf16.msra.mxu1 %v1488_v33 }
 0x7c8   : > { %v2866_v38 = vpop.eup %2865 }
 0x7c9   : > { %v1490_v42 = vpop.permute.xlu0 %1489  ;;  %v1482_v43 = vmul.f32 %v2866_v38, %v2860_v22 }
 0x7ca   : > { %v1499_v45 = vand.u32 %v1490_v42, %v3232_v35 }
 0x7cb   : > { %v2221_v46 = vrot.slane %v1482_v43, 6 }
 0x7cc   : > { %v2868_v49 = vpop.eup %2867  ;;  %2618 = vmatprep.subr.bf16.mxu1 %v1499_v45 }
 0x7cd   : > { %2619 = vmatpush3.bf16.msra.mxu1 %v1499_v45  ;;  %v1483_v34 = vmul.f32 %v2868_v49, %v2862_v24  ;;  %v2228_v50 = vsel %vm2227_vm8, %v2226_v11, %v2221_v46 }
 0x7cf   : > { %v1485_v51 = vpack.c.bf16 %v1483_v34, %v1482_v43 }
 0x7d0   : > { %v2870_v52 = vpop.eup %2869 }
 0x7d1   : > { %v1484_v53 = vmul.f32 %v2870_v52, %v2864_v26  ;;  %2620 = vmatprep.mubr.msk.bf16.mxu1 %vm928_vm5, %v1485_v51  ;;  %v2901_v52 = vld [vmem:[%s3109_s18 + $0x10] sm:$0x1] }
 0x7d3   : > { %v1486_v6 = vpack.c.bf16 %v1484_v53, %v1484_v53 }
 0x7d5   : > { %2621 = vmatmul.mubr.msk.bf16.vlgmr.msra.gmra.mrb[20].mxu1 %vm928_vm5, %v1486_v6 }
 0x7f6   : > { %v1717_v54 = vpop.xlane.xlu1 %1716 }
 0x7f7   : > { %v1724_v55 = vsub.f32 %v3387_v2, %v1717_v54  ;;  %v827_v2 = vld [vmem:[%s3590_s5 + $0x8] sm:$0xf]  ;;  %v2902_v54 = vld [vmem:[%s3109_s18] sm:$0xff] }
 0x7f8   : > { %2717 = vmatprep.subr.msk.bf16.mxu1 %vm1239_vm7, %v827_v2  ;;  %v1558_v3 = vsel %vm1239_vm7, %v827_v2, 0 }
 0x7f9   : > { %v1727_v57 = vmul.f32 1.442695, %v1724_v55  ;;  %2625 = vmatpush3.bf16.msra.mxu1 %v1558_v3 }
 0x7fa   : > { %v1720_v60 = vpop.xlane.xlu0 %1719  ;;  %v1723_v61 = vpop.xlane.xlu1 %1722 }
 0x7fb   : > { %2871 = vpow2.f32 %v1727_v57  ;;  %v1725_v58 = vsub.f32 %v3389_v4, %v1720_v60  ;;  %v1726_v63 = vsub.f32 %v3391_v7, %v1723_v61  ;;  %v2903_v60 = vld [vmem:[%s3109_s18 + $0x8] sm:$0xff]  ;;  %s3536_s18 = scalar_lea.hbm %s3599_s14, %s2438_s0 }
 0x7fd   : > { %v1729_v37 = vmul.f32 1.442695, %v1725_v58  ;;  %v1731_v14 = vmul.f32 1.442695, %v1726_v63 }
 0x7ff   : > { %2873 = vpow2.f32 %v1729_v37 }
 0x800   : > { %2875 = vpow2.f32 %v1731_v14 }
 0x805   : > { %v2872_v44 = vpop.eup %2871 }
 0x806   : > { %v1733_v47 = vsel %vm928_vm5, %v2872_v44, 0.0 }
 0x807   : > { %1734 = vadd.xlane.f32.xlu0 %v1733_v47 }
 0x809   : > { %v2874_v0 = vpop.eup %2873 }
 0x80a   : > { %v2876_v48 = vpop.eup %2875  ;;  %v1736_v1 = vsel %vm928_vm5, %v2874_v0, 0.0 }
 0x80b   : > { %1737 = vadd.xlane.f32.xlu1 %v1736_v1  ;;  %v1739_v41 = vsel %vm935_vm6, %v2876_v48, 0.0 }
 0x80c   : > { %1740 = vadd.xlane.f32.xlu0 %v1739_v41 }
 0x81c   : > { %1750 = vrot.lane.b32.xlu1 %v3236_v39, %s2974_s27 }
 0x822   : > { %1752 = vrot.lane.b32.xlu0 %v3222_v31, %s2974_s27  ;;  %s2904_s27 = scalar_lea.vmem %s2256_s15, 64 }
 0x823   : > { %p2905_p11 = scmp.ne.s32.totalorder %s2256_s15, %s2904_s27  ;;  %p2912_p1 = scmp.lt.s32.totalorder %s2910_s2, %s2904_s27 }
 0x825   : > { %p2906_p12 = pnand %p2905_p11, %p3089_p5  ;;  %p2913_p2 = por %p2912_p1, %p2911_p0 }
 0x827   : > { %p2907_p13 = pneg %p2906_p12 }
 0x829   : > { %p2914_p3 = pnand %p2913_p2, %p2907_p13 }
 0x894   : > { %v1735_v4 = vpop.xlane.xlu0 %1734 }
 0x895   : > { %2877 = vrcp.f32 %v1735_v4 }
 0x898   : > { %v1738_v5 = vpop.xlane.xlu1 %1737 }
 0x899   : > { %2879 = vrcp.f32 %v1738_v5  ;;  %v1741_v10 = vpop.xlane.xlu0 %1740 }
 0x89a   : > { %2881 = vrcp.f32 %v1741_v10 }
 0x89c   : > { %v1751_v7 = vpop.permute.xlu1 %1750 }
 0x89d   : > { %2645 = vmatprep.subr.bf16.mxu1 %v1751_v7  ;;  %v1753_v21 = vpop.permute.xlu0 %1752 }
 0x89e   : > { %v1762_v26 = vand.u32 %v1753_v21, %v3232_v35  ;;  %v2820_v21 = vld [vmem:[%s3594_s9 + $0x38] sm:$0xff]  }
 0x89f   : > { %v2878_v9 = vpop.eup %2877 }
 0x8a0   : > { %v1745_v39 = vmul.f32 %v2878_v9, %v2872_v44  ;;  %v2813_v44 = vld [vmem:[%s3594_s9] sm:$0xff]  }
 0x8a2   : > { %v2224_v12 = vrot.slane %v1745_v39, 5 }
 0x8a3   : > { %v2880_v13 = vpop.eup %2879 }
 0x8a4   : > { %v2230_v31 = vsel %vm2229_vm9, %v2228_v50, %v2224_v12  ;;  %v1746_v19 = vmul.f32 %v2880_v13, %v2874_v0  ;;  %v2882_v24 = vpop.eup %2881 }
 0x8a5   : > { %2232 = vst.msk [vmem:[%s468_s24] sm:$0xf] %vm2231_vm10, %v2230_v31  ;;  %v1747_v27 = vmul.f32 %v2882_v24, %v2876_v48 }
 0x8a6   : > { %v1748_v25 = vpack.c.bf16 %v1746_v19, %v1745_v39  ;;  %v2818_v19 = vld [vmem:[%s3594_s9 + $0x28] sm:$0xff]  }
 0x8a7   : > { %v1749_v28 = vpack.c.bf16 %v1747_v27, %v1747_v27 }
 0x8a8   : > { %v2622_v16 = vpop.f32.mrb[20].mxu1 }
 0x8a9   : > { %v1535_v17 = vpop.f32.mrb[21].mxu1  ;;  %v1550_v23 = vpack.c.bf16 %v2622_v16, %v2622_v16  ;;  %v2814_v16 = vld [vmem:[%s3594_s9 + $0x8] sm:$0xff]  }
 0x8aa   : > { %v2623_v18 = vpop.f32.mrb[22].mxu1 }
 0x8ab   : > { %v1538_v20 = vpop.f32.mrb[23].mxu1  ;;  %v2817_v18 = vld [vmem:[%s3594_s9 + $0x20] sm:$0xff]  }
 0x8ac   : > { %v1549_v22 = vpack.c.bf16 %v1538_v20, %v1535_v17  ;;  %v2815_v17 = vld [vmem:[%s3594_s9 + $0x10] sm:$0xff]  }
 0x8ad   : > { %v2819_v20 = vld [vmem:[%s3594_s9 + $0x30] sm:$0xff]  }
 0x8ae   : > { %2626 = vmatprep.mubr.msk.bf16.mxu1 %vm829_vm3, %v1549_v22 }
 0x8af   : > { %2627 = vmatmul.mubr.msk.bf16.vlgmr.msra.gmra.mrb[24].mxu1 %vm829_vm3, %v1550_v23 }
 0x8b0   : > { %2646 = vmatpush3.bf16.msra.mxu1 %v1751_v7  ;;  %2649 = vmatprep.mubr.msk.bf16.mxu1 %vm928_vm5, %v1748_v25 }
 0x8b1   : > { %2647 = vmatprep.subr.bf16.mxu1 %v1762_v26 }
 0x8b4   : > { %2648 = vmatpush3.bf16.msra.mxu1 %v1762_v26 }
 0x8b5   : > { %2659 = vmatprep.subr.bf16.mxu1 %v2813_v44 }
 0x8b7   : > { %2650 = vmatmul.mubr.msk.bf16.vlgmr.msra.gmra.mrb[28].mxu1 %vm928_vm5, %v1749_v28 }
 0x8b8   : > { %2660 = vmatpush3.bf16.msra.mxu1 %v2813_v44 }
 0x8b9   : > { %2661 = vmatprep.subr.bf16.mxu1 %v2814_v16 }
 0x8bc   : > { %2662 = vmatpush3.bf16.msra.mxu1 %v2814_v16 }
 0x8bd   : > { %2663 = vmatprep.subr.bf16.mxu1 %v2815_v17 }
 0x8c0   : > { %2664 = vmatpush3.bf16.msra.mxu1 %v2815_v17 }
 0x982   : > { %v2628_v35 = vpop.f32.mrb[24].mxu1 }
 0x983   : > { %v1610_v30 = vadd.f32 %v2628_v35, %v3378_v56  ;;  %v1594_v32 = vpop.f32.mrb[25].mxu1 }
 0x984   : > { %v1608_v33 = vadd.f32 %v1594_v32, %v3380_v59  ;;  %v2629_v36 = vpop.f32.mrb[26].mxu1 }
 0x985   : > { %v1597_v38 = vpop.f32.mrb[27].mxu1 }
 0x986   : > { %v1609_v40 = vadd.f32 %v1597_v38, %v3382_v62  ;;  %v2413_v62 = vld [vmem:[%s3591_s6] ss:$0 sm:$0xff] }
 0x98a   : > { %v2651_v42 = vpop.f32.mrb[28].mxu1 }
 0x98b   : > { %v1798_v43 = vpop.f32.mrb[29].mxu1  ;;  %v1813_v11 = vpack.c.bf16 %v2651_v42, %v2651_v42 }
 0x98c   : > { %v2652_v45 = vpop.f32.mrb[30].mxu1 }
 0x98d   : > { %v1801_v46 = vpop.f32.mrb[31].mxu1 }
 0x98e   : > { %v1812_v49 = vpack.c.bf16 %v1801_v46, %v1798_v43 }
 0x990   : > { %2655 = vmatprep.mubr.msk.bf16.mxu0 %vm829_vm3, %v1812_v49 }
 0x991   : > { %2656 = vmatmul.mubr.msk.bf16.vlgmr.msra.gmra.mrb[32].mxu0 %vm829_vm3, %v1813_v11 }
 0xa64   : > { %v2657_v56 = vpop.f32.mrb[32].mxu0 }
 0xa65   : > { %v1873_v34 = vadd.f32 %v2657_v56, %v1610_v30  ;;  %v1857_v59 = vpop.f32.mrb[33].mxu0  ;;  %v2414_v30 = vld [vmem:[%s3592_s7] ss:$0 sm:$0xff] }
 0xa66   : > { %v1871_v50 = vadd.f32 %v1857_v59, %v1608_v33  ;;  %v2658_v51 = vpop.f32.mrb[34].mxu0 }
 0xa67   : > { %v1876_v53 = vadd.f32 %v2901_v52, %v1873_v34  ;;  %v1860_v6 = vpop.f32.mrb[35].mxu0  ;;  %v2822_v51 = vld [vmem:[%s3596_s11 + $0x8] sm:$0xff]   ;;  %v2823_v52 = vld [vmem:[%s3596_s11 + $0x10] sm:$0xff]  }
 0xa68   : > { %v1874_v55 = vadd.f32 %v2902_v54, %v1871_v50  ;;  %v1872_v57 = vadd.f32 %v1860_v6, %v1609_v40  ;;  %v2415_v40 = vld [vmem:[%s3593_s8] ss:$0 sm:$0xff]  ;;  %v2826_v6 = vld [vmem:[%s3596_s11 + $0x28] sm:$0xff]   ;;  %v2827_v54 = vld [vmem:[%s3596_s11 + $0x30] sm:$0xff]  }
 0xa69   : > { %v3458_v63 = vadd.f32 %v2413_v62, %v1876_v53  ;;  %v2821_v50 = vld [vmem:[%s3596_s11] sm:$0xff]   ;;  %v2824_v53 = vld [vmem:[%s3596_s11 + $0x18] sm:$0xff]  }
 0xa6a   : > { %v1875_v61 = vadd.f32 %v2903_v60, %v1872_v57  ;;  %v3456_v58 = vadd.f32 %v2413_v62, %v1874_v55  ;;  %2679 = vmatprep.subr.bf16.mxu0 %v2821_v50  ;;  %v2828_v55 = vld [vmem:[%s3596_s11 + $0x38] sm:$0xff]   ;;  %v2416_v57 = vld [vmem:[%s3595_s10] ss:$0 sm:$0xff] }
 0xa6b   : > { %v1893_v14 = vsel %vm494_vm0, %v3458_v63, 0.0  ;;  %2680 = vmatpush3.bf16.msra.mxu0 %v2821_v50 }
 0xa6c   : > { %1889 = vadd.xlane.f32.xlu1 %v3456_v58  ;;  %v3461_v37 = vadd.f32 %v2413_v62, %v1875_v61  ;;  %2681 = vmatprep.subr.bf16.mxu0 %v2822_v51  ;;  %v2825_v62 = vld [vmem:[%s3596_s11 + $0x20] sm:$0xff]  }
 0xa6e   : > { %1891 = vadd.xlane.f32.xlu0 %v3461_v37 }
 0xa6f   : > { %2682 = vmatpush3.bf16.msra.mxu0 %v2822_v51 }
 0xa70   : > { %1894 = vadd.xlane.f32.xlu1 %v1893_v14  ;;  %2683 = vmatprep.subr.bf16.mxu0 %v2823_v52 }
 0xa73   : > { %2684 = vmatpush3.bf16.msra.mxu0 %v2823_v52 }
 0xa74   : > { %2685 = vmatprep.subr.bf16.mxu0 %v2824_v53 }
 0xa77   : > { %2686 = vmatpush3.bf16.msra.mxu0 %v2824_v53 }
 0xa78   : > { %2687 = vmatprep.subr.bf16.mxu0 %v2825_v62 }
 0xa7b   : > { %2688 = vmatpush3.bf16.msra.mxu0 %v2825_v62 }
 0xa7c   : > { %2689 = vmatprep.subr.bf16.mxu0 %v2826_v6 }
 0xa7f   : > { %2690 = vmatpush3.bf16.msra.mxu0 %v2826_v6 }
 0xa80   : > { %2691 = vmatprep.subr.bf16.mxu0 %v2827_v54 }
 0xa83   : > { %2692 = vmatpush3.bf16.msra.mxu0 %v2827_v54 }
 0xa84   : > { %2693 = vmatprep.subr.bf16.mxu0 %v2828_v55 }
 0xa87   : > { %2694 = vmatpush3.bf16.msra.mxu0 %v2828_v55 }
 0xaf9   : > { %v1890_v47 = vpop.xlane.xlu1 %1889 }
 0xafa   : > { %v1896_v0 = vmul.f32 0.03125, %v1890_v47 }
 0xafb   : > { %v1892_v48 = vpop.xlane.xlu0 %1891 }
 0xafc   : > { %v1899_v1 = vsub.f32 %v3456_v58, %v1896_v0  ;;  %v1897_v41 = vmul.f32 0.03125, %v1892_v48 }
 0xafd   : > { %v1895_v2 = vpop.xlane.xlu1 %1894 }
 0xafe   : > { %v1900_v3 = vsub.f32 %v3461_v37, %v1897_v41  ;;  %v1898_v4 = vmul.f32 0.03125, %v1895_v2  ;;  %v1902_v5 = vmul.f32 %v3129_v15, %v1899_v1 }
 0xb00   : > { %v1901_v7 = vsub.f32 %v3458_v63, %v1898_v4  ;;  %v1905_v9 = vmul.f32 %v1902_v5, %v1902_v5  ;;  %v1903_v39 = vmul.f32 %v3129_v15, %v1900_v3 }
 0xb02   : > { %1908 = vadd.xlane.f32.xlu0 %v1905_v9  ;;  %v1906_v10 = vmul.f32 %v1903_v39, %v1903_v39  ;;  %v1904_v12 = vmul.f32 %v3129_v15, %v1901_v7  ;;  %v2816_v15 = vld [vmem:[%s3594_s9 + $0x18] sm:$0xff]  }
 0xb03   : > { %2665 = vmatprep.subr.bf16.mxu1 %v2816_v15 }
 0xb04   : > { %1910 = vadd.xlane.f32.xlu1 %v1906_v10  ;;  %v1907_v31 = vmul.f32 %v1904_v12, %v1904_v12  ;;  %2666 = vmatpush3.bf16.msra.mxu1 %v2816_v15 }
 0xb05   : > { %2667 = vmatprep.subr.bf16.mxu1 %v2817_v18 }
 0xb06   : > { %v1912_v13 = vsel %vm494_vm0, %v1907_v31, 0.0 }
 0xb07   : > { %1913 = vadd.xlane.f32.xlu0 %v1912_v13 }
 0xb08   : > { %2668 = vmatpush3.bf16.msra.mxu1 %v2817_v18 }
 0xb09   : > { %2669 = vmatprep.subr.bf16.mxu1 %v2818_v19 }
 0xb0c   : > { %2670 = vmatpush3.bf16.msra.mxu1 %v2818_v19 }
 0xb0d   : > { %2671 = vmatprep.subr.bf16.mxu1 %v2819_v20 }
 0xb10   : > { %2672 = vmatpush3.bf16.msra.mxu1 %v2819_v20 }
 0xb11   : > { %2673 = vmatprep.subr.bf16.mxu1 %v2820_v21 }
 0xb14   : > { %2674 = vmatpush3.bf16.msra.mxu1 %v2820_v21 }
 0xb8f   : > { %v1909_v22 = vpop.xlane.xlu0 %1908 }
 0xb90   : > { %v1915_v23 = vmul.f32 0.03125, %v1909_v22 }
 0xb91   : > { %v1911_v24 = vpop.xlane.xlu1 %1910 }
 0xb92   : > { %v1918_v25 = vadd.f32 1e-05, %v1915_v23  ;;  %v1916_v26 = vmul.f32 0.03125, %v1911_v24 }
 0xb94   : > { %2883 = vrsqrt.f32 %v1918_v25  ;;  %v1919_v27 = vadd.f32 1e-05, %v1916_v26  ;;  %v1914_v28 = vpop.xlane.xlu0 %1913 }
 0xb95   : > { %v1917_v29 = vmul.f32 0.03125, %v1914_v28 }
 0xb96   : > { %2885 = vrsqrt.f32 %v1919_v27 }
 0xb97   : > { %v1920_v8 = vadd.f32 1e-05, %v1917_v29 }
 0xb99   : > { %2887 = vrsqrt.f32 %v1920_v8 }
 0xb9e   : > { %v2884_v35 = vpop.eup %2883 }
 0xb9f   : > { %v1924_v32 = vmul.f32 %v2884_v35, %v1899_v1 }
 0xba0   : > { %v2886_v33 = vpop.eup %2885 }
 0xba1   : > { %v1925_v36 = vmul.f32 %v2886_v33, %v1900_v3  ;;  %v1933_v38 = vmul.f32 %v2414_v30, %v1924_v32 }
 0xba3   : > { %v2888_v42 = vpop.eup %2887  ;;  %v1934_v43 = vmul.f32 %v2414_v30, %v1925_v36  ;;  %v1942_v46 = vadd.f32 %v2415_v40, %v1933_v38 }
 0xba4   : > { %v1926_v45 = vmul.f32 %v2888_v42, %v1901_v7 }
 0xba5   : > { %v1943_v49 = vadd.f32 %v2415_v40, %v1934_v43 }
 0xba6   : > { %v1935_v11 = vmul.f32 %v2414_v30, %v1926_v45 }
 0xba7   : > { %v1945_v56 = vpack.c.bf16 %v1943_v49, %v1942_v46 }
 0xba8   : > { %v1944_v34 = vadd.f32 %v2415_v40, %v1935_v11 }
 0xba9   : > { %2675 = vmatprep.mubr.bf16.mxu1 %v1945_v56 }
 0xbaa   : > { %v1946_v59 = vpack.c.bf16 %v1944_v34, %v1944_v34 }
 0xbac   : > { %2676 = vmatmul.mubr.bf16.vlgmr.msra.gmra.mrb[32].mxu1 %v1946_v59 }
 0xc7f   : > { %v2677_v60 = vpop.f32.mrb[32].mxu1 }
 0xc80   : > { %v2061_v61 = vadd.f32 %v2677_v60, %v2416_v57  ;;  %v2052_v14 = vpop.f32.mrb[33].mxu1 }
 0xc81   : > { %v2053_v44 = vadd.f32 %v2416_v57, %v2052_v14  ;;  %v2678_v47 = vpop.f32.mrb[34].mxu1 }
 0xc82   : > { %v2427_v0 = vmul.f32 -1.702, %v2061_v61  ;;  %v2055_v48 = vpop.f32.mrb[35].mxu1 }
 0xc83   : > { %v2425_v1 = vmul.f32 -1.702, %v2053_v44  ;;  %v2056_v41 = vadd.f32 %v2416_v57, %v2055_v48 }
 0xc84   : > { %v2076_v2 = vmul.f32 1.442695, %v2427_v0 }
 0xc85   : > { %v2072_v3 = vmul.f32 1.442695, %v2425_v1  ;;  %v2426_v4 = vmul.f32 -1.702, %v2056_v41 }
 0xc86   : > { %2889 = vpow2.f32 %v2076_v2 }
 0xc87   : > { %2891 = vpow2.f32 %v2072_v3  ;;  %v2074_v5 = vmul.f32 1.442695, %v2426_v4 }
 0xc89   : > { %2893 = vpow2.f32 %v2074_v5 }
 0xc90   : > { %v2890_v7 = vpop.eup %2889 }
 0xc91   : > { %v2892_v9 = vpop.eup %2891  ;;  %v2080_v39 = vadd.f32 1.0, %v2890_v7 }
 0xc92   : > { %v2078_v10 = vadd.f32 1.0, %v2892_v9 }
 0xc93   : > { %v2894_v12 = vpop.eup %2893  ;;  %2895 = vrcp.f32 %v2080_v39 }
 0xc94   : > { %2897 = vrcp.f32 %v2078_v10  ;;  %v2079_v31 = vadd.f32 1.0, %v2894_v12 }
 0xc96   : > { %2899 = vrcp.f32 %v2079_v31 }
 0xc9d   : > { %v2896_v13 = vpop.eup %2895 }
 0xc9e   : > { %v2898_v16 = vpop.eup %2897  ;;  %v2089_v15 = vmul.f32 %v2896_v13, %v2061_v61 }
 0xc9f   : > { %v2087_v18 = vmul.f32 %v2898_v16, %v2053_v44 }
 0xca0   : > { %v2900_v17 = vpop.eup %2899  ;;  %v2091_v21 = vpack.c.bf16 %v2089_v15, %v2089_v15 }
 0xca1   : > { %v2088_v19 = vmul.f32 %v2900_v17, %v2056_v41 }
 0xca3   : > { %v2090_v20 = vpack.c.bf16 %v2088_v19, %v2087_v18 }
 0xca5   : > { %2695 = vmatprep.mubr.bf16.mxu0 %v2090_v20 }
 0xca6   : > { %2696 = vmatmul.mubr.bf16.vlgmr.msra.gmra.mrb[36].mxu0 %v2091_v21 }
 0xca7   : > { %2917 = shalt.err (!%p2914_p3)
}
 0xca8   : > { %s2918_s17 = scalar_lea.hbm %s3536_s18, 64  ;;  %s2922_s24 = scalar_lea.hbm %s3599_s14, 128 }
 0xca9   : > { %p2919_p4 = scmp.ne.s32.totalorder %s3536_s18, %s2918_s17  ;;  %p2923_p9 = scmp.lt.u32.totalorder %s3536_s18, %s3599_s14 }
 0xcaa   : > { %p2924_p10 = scmp.lt.u32.totalorder %s2922_s24, %s2918_s17  ;;  %p2926_p12 = scmp.lt.u32.totalorder %s2918_s17, %s3536_s18 }
 0xcab   : > { %p2920_p7 = pnand %p2919_p4, %p3089_p5 }
 0xcac   : > { %p2925_p11 = por %p2924_p10, %p2923_p9 }
 0xcad   : > { %p2921_p8 = pneg %p2920_p7 }
 0xcae   : > { %p2927_p13 = por %p2926_p12, %p2925_p11 }
 0xcb0   : > { %p2928_p0 = pnand %p2927_p13, %p2921_p8 }
 0xcb2   : > { %2931 = shalt.err (!%p2928_p0)
}
 0xcb3   : > { %2720 = dma.vmem_to_hbm [thread:$0]  (%p3089_p5), %s2256_s15, 64, %s3536_s18, %s2239_s20   ;;  %v2428_v22 = vld [vmem:[%s3597_s12] ss:$0 sm:$0xff] }
 0xcb4   : > { %s3619_s26 = smul.u32 24, %s3101_s25 }
 0xcb6   : > { %s478_s17 = scalar_lea.vmem %s3598_s13, %s3619_s26 }
 0xd79   : > { %v2697_v23 = vpop.f32.mrb[36].mxu0 }
 0xd7a   : > { %v2206_v24 = vadd.f32 %v2697_v23, %v2428_v22  ;;  %v2197_v25 = vpop.f32.mrb[37].mxu0 }
 0xd7b   : > { %v2198_v26 = vadd.f32 %v2428_v22, %v2197_v25  ;;  %v2698_v27 = vpop.f32.mrb[38].mxu0 }
 0xd7c   : > { %v2213_v28 = vadd.f32 %v2206_v24, %v3458_v63  ;;  %v2200_v29 = vpop.f32.mrb[39].mxu0 }
 0xd7d   : > { %v2211_v8 = vadd.f32 %v2198_v26, %v3456_v58  ;;  %v2201_v35 = vadd.f32 %v2428_v22, %v2200_v29 }
 0xd7e   : > { %2216 = vst [vmem:[%s478_s17 + $0x10] sm:$0x1] %v2213_v28 }
 0xd7f   : > { %2214 = vst [vmem:[%s478_s17] sm:$0xff] %v2211_v8  ;;  %v2212_v30 = vadd.f32 %v2201_v35, %v3461_v37 }
 0xd81   : > { %2215 = vst [vmem:[%s478_s17 + $0x8] sm:$0xff] %v2212_v30 }
 0xd82 PF: > { %p2726_p5 = scmp.ge.s32.totalorder %s2966_s16, 2  ;;  %s2275_s25 = sand.u32 1, %s2954_s29  }
 0xd83   : > { %s2276_s15 = scalar_lea.sflag [#allocation3], %s2275_s25 }
 0xd84   : > { %p2723_p1 = pnand %p2726_p5, %p3093_p6 }
 0xd86   : > { %2949 = dma.done.wait (!%p2723_p1), %s2276_s15, 64  }
 0xd87   : > { %2951 = vsyncadd (!%p2723_p1), %s2276_s15, 4294967232  ;;  %s3621_s16 = sld [smem:[#allocation6_spill]]  ;;  %s3622_s18 = sld [smem:[#allocation5_spill]] }
 0xd88   : > { %s3623_s15 = sld [smem:[#allocation7_spill]]  ;;  %s3624_s29 = smov %s2958_s30 }
 0xd8d   : > { %p25_p2 = scmp.ge.s32.totalorder %s3621_s16, 4   ;;  %s3625_s30 = smov %s3622_s18 }
 0xd8f   :  { %27 = sbr.rel (!%p25_p2) target bundleno = 7 (0x7), region = 119 }
 0xd96   :  { %2281 = vsyncpa [#allocation3], 1 }
 0xd97   :  { %2283 = vsyncpa [#allocation3 + $0x1], 1 }

</bundles_post_ra>
